<compile_context>
chip_gen: v7x
topology: tpu7x:2x2x1
jax: 0.10.0
libtpu: 0.0.40
codegen_flags: <defaults>
</compile_context>

<pallas_src>
import functools

import jax
import jax.numpy as jnp
from jax.experimental import pallas as pl
from jax.experimental.pallas import tpu as pltpu

BN_EPS = 1e-5
_VMEM_SOFT_BUDGET = 24 * 1024 * 1024   # per-step working-set budget (v7x-safe)


def _conv_stats_kernel(x_ref, w_ref, b_ref, y_ref, stats_ref, *, tile_px, row_w):
    """Pass 1: 3x3 conv (kx packed into K) for one (image, row-block) tile + tile stats.

    x_ref:     [(TH+2)*W, 3C] bf16   kx-packed padded rows (flat over (row, col))
    w_ref:     [3, 3C, Fp]    bf16   per-ky taps, row index = kx*C + c
    b_ref:     [1, Fp]        f32    conv bias
    y_ref:     [TH*W, Fp]     bf16   pre-BN conv output (written once)
    stats_ref: [2, Fp]        f32    row 0 = tile mean, row 1 = tile M2 = sum((y-mean)^2)
    """
    acc = None
    for ky in range(3):
        # Static sublane-range load of the ky-shifted window; trailing (lane) dim is whole,
        # so no relayout copy.  K = 3C per matmul.
        xs = x_ref[ky * row_w: ky * row_w + tile_px, :]
        part = jnp.dot(xs, w_ref[ky], preferred_element_type=jnp.float32)
        acc = part if acc is None else acc + part
    acc = acc + b_ref[...]                       # conv bias (exact module semantics)

    y_ref[...] = acc.astype(y_ref.dtype)         # single store of the tile

    inv_n = 1.0 / float(tile_px)
    mean_t = jnp.sum(acc, axis=0, keepdims=True) * inv_n
    d = acc - mean_t
    stats_ref[0:1, :] = mean_t
    stats_ref[1:2, :] = jnp.sum(d * d, axis=0, keepdims=True)


def _bn_relu_kernel(y_ref, scale_ref, shift_ref, o_ref, *, f):
    """Pass 2: folded BN affine + ReLU, pure elementwise, un-padded lane store.

    y_ref: [TH*W, Fp] bf16    scale/shift: [1, Fp] f32    o_ref: [TH*W, F] f32
    """
    z = y_ref[...].astype(jnp.float32) * scale_ref[...] + shift_ref[...]
    o_ref[...] = jnp.maximum(z[:, :f], 0.0)


def _per_pixel_vmem_bytes(c3, fp, f):
    """Approximate per-output-pixel VMEM footprint (lane dims pad to 128 in VMEM)."""
    lane = lambda d: max(d, 128)
    x_b = 2 * 2 * lane(c3)       # bf16 slab block, double-buffered
    y_b = 2 * 2 * lane(fp)       # bf16 y block, double-buffered
    acc_b = 2 * 4 * lane(fp)     # f32 accumulator + centered copy (vregs / spill)
    o_b = 2 * 4 * lane(f)        # f32 pass-2 output block, double-buffered
    return max(x_b + y_b + acc_b, y_b + o_b)


def _choose_tile_h(n, h, w, max_pixels):
    """Pick TILE_H | H with TILE_H*W a multiple of 128 and <= max_pixels; prefer a grid of
    n*num_hb >= 2 (even if possible) so both v7x TensorCores stay busy."""
    divs = [d for d in range(1, h + 1) if h % d == 0]
    lane_ok = [d for d in divs if (d * w) % 128 == 0]
    cands = [d for d in lane_ok if d * w <= max_pixels]
    if not cands:
        # Fallback: smallest lane-aligned block, else one block per image
        # (legal full-dim block; masked stores -> perf cliff only, not a bug).
        return min(lane_ok) if lane_ok else h

    def grid_sz(d):
        return n * (h // d)

    best = max(cands)
    if grid_sz(best) < 2 or grid_sz(best) % 2:
        even = [d for d in cands if grid_sz(d) >= 2 and grid_sz(d) % 2 == 0]
        if even:
            best = max(even)
        else:
            two_plus = [d for d in cands if grid_sz(d) >= 2]
            if two_plus:
                best = max(two_plus)
    return best


@functools.partial(jax.jit, static_argnames=("max_tile_pixels",))
def conv_bn_relu(x, weight, bias, gamma, beta, *, max_tile_pixels=2048):
    """x: [N, C, H, W] f32; weight: [F, C, 3, 3]; bias/gamma/beta: [F].
    Returns [N, F, H, W] f32 (conv + training-mode BatchNorm + ReLU)."""
    n, c, h, w = x.shape
    f = weight.shape[0]
    fp = ((f + 7) // 8) * 8          # tiny pad to a multiple of 8 (NOT 128)
    c3 = 3 * c                       # kx packed into the contraction dim

    per_px = _per_pixel_vmem_bytes(c3, fp, f)
    px_cap = max(128, int(_VMEM_SOFT_BUDGET // per_px))
    th = _choose_tile_h(n, h, w, min(max_tile_pixels, px_cap))
    num_hb = h // th
    thp = th + 2
    tile_px = th * w
    row_px = thp * w

    # ---- layout prep in XLA (cheap passes over the small input tensor) ----
    x_nhwc = jnp.transpose(x, (0, 2, 3, 1)).astype(jnp.bfloat16)        # [N,H,W,C]
    xp = jnp.pad(x_nhwc, ((0, 0), (1, 1), (1, 1), (0, 0)))              # [N,H+2,W+2,C]
    # kx-packed: xkx[n, i, j, kx*C + c] = xp[n, i, j+kx, c]  -> [N, H+2, W, 3C]
    xkx = jnp.concatenate([xp[:, :, k:k + w, :] for k in range(3)], axis=-1)
    if num_hb == 1:
        slabs = xkx.reshape(n, 1, row_px, c3)            # free reshape, no duplication
    else:
        # Overlapping (TH+2)-row slabs; only (TH+2)/TH duplication of a small bf16 tensor.
        slabs = jnp.stack([xkx[:, i * th:i * th + thp] for i in range(num_hb)], axis=1)
        slabs = slabs.reshape(n, num_hb, row_px, c3)

    # weight [F,C,3,3] -> [ky,kx,C,F] -> [3, 3C, F] -> pad F->Fp -> bf16
    w_taps = jnp.transpose(weight, (2, 3, 1, 0)).reshape(3, c3, f)
    w_taps = jnp.pad(w_taps, ((0, 0), (0, 0), (0, fp - f))).astype(jnp.bfloat16)
    bias_p = jnp.pad(bias.astype(jnp.float32), (0, fp - f)).reshape(1, fp)

    vmem_limit = int(min(48 << 20, max(32 << 20, 2 * per_px * tile_px + (4 << 20))))
    cparams = pltpu.CompilerParams(
        dimension_semantics=("parallel", "parallel"),
        vmem_limit_bytes=vmem_limit)

    # ---- pass 1: conv (3 matmuls, K=3C, bf16 in / f32 local acc) + per-tile (mean, M2) --
    y_pre, stats = pl.pallas_call(
        functools.partial(_conv_stats_kernel, tile_px=tile_px, row_w=w),
        grid=(n, num_hb),
        in_specs=[
            pl.BlockSpec((None, None, row_px, c3), lambda i, j: (i, j, 0, 0)),
            pl.BlockSpec((3, c3, fp), lambda i, j: (0, 0, 0)),
            pl.BlockSpec((1, fp), lambda i, j: (0, 0)),
        ],
        out_specs=[
            pl.BlockSpec((None, None, tile_px, fp), lambda i, j: (i, j, 0, 0)),
            pl.BlockSpec((None, None, 2, fp), lambda i, j: (i, j, 0, 0)),
        ],
        out_shape=[
            jax.ShapeDtypeStruct((n, num_hb, tile_px, fp), jnp.bfloat16),
            jax.ShapeDtypeStruct((n, num_hb, 2, fp), jnp.float32),
        ],
        compiler_params=cparams,
    )(slabs, w_taps, bias_p)

    # ---- tiny [F]-sized exact stat combine (Chan) + folded BN affine (plain XLA) ----
    tile_mean = stats[:, :, 0, :].reshape(-1, fp)
    tile_m2 = stats[:, :, 1, :].reshape(-1, fp)
    count = jnp.float32(n * h * w)
    mean = jnp.mean(tile_mean, axis=0)                       # equal per-tile counts
    m2 = jnp.sum(tile_m2, axis=0) + jnp.float32(tile_px) * jnp.sum(
        (tile_mean - mean) ** 2, axis=0)
    var = m2 / count                                         # biased var (training BN)
    gamma_p = jnp.pad(gamma.astype(jnp.float32), (0, fp - f))
    beta_p = jnp.pad(beta.astype(jnp.float32), (0, fp - f))
    scale_v = gamma_p * jax.lax.rsqrt(var + BN_EPS)
    shift_v = beta_p - mean * scale_v
    scale = scale_v.reshape(1, fp)
    shift = shift_v.reshape(1, fp)

    # ---- pass 2: tiled y*scale + shift + ReLU, un-padded lane store ----
    out_nhwc = pl.pallas_call(
        functools.partial(_bn_relu_kernel, f=f),
        grid=(n, num_hb),
        in_specs=[
            pl.BlockSpec((None, None, tile_px, fp), lambda i, j: (i, j, 0, 0)),
            pl.BlockSpec((1, fp), lambda i, j: (0, 0)),
            pl.BlockSpec((1, fp), lambda i, j: (0, 0)),
        ],
        out_specs=pl.BlockSpec((None, None, tile_px, f), lambda i, j: (i, j, 0, 0)),
        out_shape=jax.ShapeDtypeStruct((n, num_hb, tile_px, f), jnp.float32),
        compiler_params=cparams,
    )(y_pre, scale, shift)

    # Free reshape to NHWC, then one bandwidth-bound XLA transpose to NCHW.
    out_nhwc = out_nhwc.reshape(n, h, w, f)
    return jnp.transpose(out_nhwc, (0, 3, 1, 2))


def _reference(x, weight, bias, gamma, beta, conv_dtype=jnp.float32):
    """Pure-JAX reference (conv + training-mode BN + ReLU). `conv_dtype=bfloat16`
    quantizes the conv inputs the same way the kernel's MXU path does."""
    xc = x.astype(conv_dtype).astype(jnp.float32)
    wc = weight.astype(conv_dtype).astype(jnp.float32)
    y = jax.lax.conv_general_dilated(
        xc, wc, window_strides=(1, 1), padding=((1, 1), (1, 1)),
        dimension_numbers=("NCHW", "OIHW", "NCHW"))
    y = y + bias.reshape(1, -1, 1, 1)
    mean = jnp.mean(y, axis=(0, 2, 3), keepdims=True)
    var = jnp.mean((y - mean) ** 2, axis=(0, 2, 3), keepdims=True)
    y = (y - mean) * jax.lax.rsqrt(var + BN_EPS)
    y = y * gamma.reshape(1, -1, 1, 1) + beta.reshape(1, -1, 1, 1)
    return jnp.maximum(y, 0.0)


if __name__ == "__main__":
    key = jax.random.PRNGKey(0)
    k_x, k_w, k_b = jax.random.split(key, 3)

    N, C, H, W = 2, 4, 16, 16
    FEAT = 8

    x = jax.random.normal(k_x, (N, C, H, W), dtype=jnp.float32)
    fan_in = C * 3 * 3
    bound = 1.0 / (fan_in ** 0.5)
    weight = jax.random.uniform(k_w, (FEAT, C, 3, 3), jnp.float32, -bound, bound)
    bias = jax.random.uniform(k_b, (FEAT,), jnp.float32, -bound, bound)
    gamma = jnp.ones((FEAT,), jnp.float32)
    beta = jnp.zeros((FEAT,), jnp.float32)

    out = jax.block_until_ready(conv_bn_relu(x, weight, bias, gamma, beta))
    assert out.shape == (N, FEAT, H, W)

    # Check vs a reference using the same bf16 MXU input precision (f32 accumulate);
    # tolerance covers the bf16 storage of y_pre between the two passes.
    ref_bf16 = _reference(x, weight, bias, gamma, beta, conv_dtype=jnp.bfloat16)
    assert jnp.allclose(out, ref_bf16, atol=3e-2, rtol=3e-2), "mismatch vs bf16-input ref"

    # Loose check vs exact f32 module semantics (difference is only bf16 rounding).
    ref_f32 = _reference(x, weight, bias, gamma, beta, conv_dtype=jnp.float32)
    assert jnp.allclose(out, ref_f32, atol=8e-2, rtol=8e-2), "mismatch vs f32 reference"

    # Extra path coverage: multiple row-blocks per image (num_hb > 1) and odd C / F.
    x2 = jax.random.normal(jax.random.PRNGKey(1), (1, 3, 16, 16), dtype=jnp.float32)
    w2 = jax.random.uniform(jax.random.PRNGKey(2), (5, 3, 3, 3), jnp.float32, -0.2, 0.2)
    b2 = jax.random.uniform(jax.random.PRNGKey(3), (5,), jnp.float32, -0.2, 0.2)
    g2 = jnp.full((5,), 1.5, jnp.float32)
    bt2 = jnp.full((5,), -0.1, jnp.float32)
    out2 = jax.block_until_ready(
        conv_bn_relu(x2, w2, b2, g2, bt2, max_tile_pixels=128))
    ref2 = _reference(x2, w2, b2, g2, bt2, conv_dtype=jnp.bfloat16)
    assert out2.shape == (1, 5, 16, 16)
    assert jnp.allclose(out2, ref2, atol=3e-2, rtol=3e-2), "mismatch on multi-block case"

    print("KERNEL_OK")
</pallas_src>

<mosaic_0001>
module attributes {stable_mosaic.version = 11 : i64} {
  func.func @_conv_stats_kernel(%arg0: i32, %arg1: i32, %arg2: memref<1x1x288x12xbf16, #tpu.memory_space<vmem>>, %arg3: memref<3x12x8xbf16, #tpu.memory_space<vmem>>, %arg4: memref<1x8xf32, #tpu.memory_space<vmem>>, %arg5: memref<1x1x256x8xbf16, #tpu.memory_space<vmem>>, %arg6: memref<1x1x2x8xf32, #tpu.memory_space<vmem>>) attributes {dimension_semantics = [#tpu.dimension_semantics<parallel>, #tpu.dimension_semantics<parallel>], iteration_bounds = array<i64: 2, 1>, scalar_prefetch = 0 : i64, scratch_operands = 0 : i64, tpu.core_type = #tpu.core_type<tc>, window_params = [{transform_indices = @transform_0, window_bounds = array<i64: 1, 1, 288, 12>}, {pipeline_mode = #tpu.pipeline_mode<synchronous>, transform_indices = @transform_1, window_bounds = array<i64: 3, 12, 8>}, {pipeline_mode = #tpu.pipeline_mode<synchronous>, transform_indices = @transform_2, window_bounds = array<i64: 1, 8>}, {transform_indices = @transform_3, window_bounds = array<i64: 1, 1, 256, 8>}, {transform_indices = @transform_4, window_bounds = array<i64: 1, 1, 2, 8>}]} {
    %c0 = arith.constant 0 : index
    %c0_0 = arith.constant 0 : index
    %c0_1 = arith.constant 0 : index
    %c0_2 = arith.constant 0 : index
    %0 = vector.load %arg2[%c0, %c0_0, %c0_1, %c0_2] : memref<1x1x288x12xbf16, #tpu.memory_space<vmem>>, vector<1x1x256x12xbf16>
    %1 = vector.shape_cast %0 : vector<1x1x256x12xbf16> to vector<256x12xbf16>
    %c0_3 = arith.constant 0 : index
    %c0_4 = arith.constant 0 : index
    %c0_5 = arith.constant 0 : index
    %2 = vector.load %arg3[%c0_3, %c0_4, %c0_5] : memref<3x12x8xbf16, #tpu.memory_space<vmem>>, vector<1x12x8xbf16>
    %3 = vector.shape_cast %2 : vector<1x12x8xbf16> to vector<12x8xbf16>
    %cst = arith.constant dense<0.000000e+00> : vector<256x8xf32>
    %4 = tpu.matmul %1, %3, %cst {dimension_numbers = #tpu.dot_dimension_numbers<[1], [0], [0], [1], [0, 0, 1, 1], [], []>} : vector<256x12xbf16>, vector<12x8xbf16>, vector<256x8xf32> -> vector<256x8xf32>
    %c0_6 = arith.constant 0 : index
    %c0_7 = arith.constant 0 : index
    %c16 = arith.constant 16 : index
    %c0_8 = arith.constant 0 : index
    %5 = vector.load %arg2[%c0_6, %c0_7, %c16, %c0_8] : memref<1x1x288x12xbf16, #tpu.memory_space<vmem>>, vector<1x1x256x12xbf16>
    %6 = vector.shape_cast %5 : vector<1x1x256x12xbf16> to vector<256x12xbf16>
    %c1 = arith.constant 1 : index
    %c0_9 = arith.constant 0 : index
    %c0_10 = arith.constant 0 : index
    %7 = vector.load %arg3[%c1, %c0_9, %c0_10] : memref<3x12x8xbf16, #tpu.memory_space<vmem>>, vector<1x12x8xbf16>
    %8 = vector.shape_cast %7 : vector<1x12x8xbf16> to vector<12x8xbf16>
    %cst_11 = arith.constant dense<0.000000e+00> : vector<256x8xf32>
    %9 = tpu.matmul %6, %8, %cst_11 {dimension_numbers = #tpu.dot_dimension_numbers<[1], [0], [0], [1], [0, 0, 1, 1], [], []>} : vector<256x12xbf16>, vector<12x8xbf16>, vector<256x8xf32> -> vector<256x8xf32>
    %10 = arith.addf %4, %9 : vector<256x8xf32>
    %c0_12 = arith.constant 0 : index
    %c0_13 = arith.constant 0 : index
    %c32 = arith.constant 32 : index
    %c0_14 = arith.constant 0 : index
    %11 = vector.load %arg2[%c0_12, %c0_13, %c32, %c0_14] : memref<1x1x288x12xbf16, #tpu.memory_space<vmem>>, vector<1x1x256x12xbf16>
    %12 = vector.shape_cast %11 : vector<1x1x256x12xbf16> to vector<256x12xbf16>
    %c2 = arith.constant 2 : index
    %c0_15 = arith.constant 0 : index
    %c0_16 = arith.constant 0 : index
    %13 = vector.load %arg3[%c2, %c0_15, %c0_16] : memref<3x12x8xbf16, #tpu.memory_space<vmem>>, vector<1x12x8xbf16>
    %14 = vector.shape_cast %13 : vector<1x12x8xbf16> to vector<12x8xbf16>
    %cst_17 = arith.constant dense<0.000000e+00> : vector<256x8xf32>
    %15 = tpu.matmul %12, %14, %cst_17 {dimension_numbers = #tpu.dot_dimension_numbers<[1], [0], [0], [1], [0, 0, 1, 1], [], []>} : vector<256x12xbf16>, vector<12x8xbf16>, vector<256x8xf32> -> vector<256x8xf32>
    %16 = arith.addf %10, %15 : vector<256x8xf32>
    %c0_18 = arith.constant 0 : index
    %c0_19 = arith.constant 0 : index
    %17 = vector.load %arg4[%c0_18, %c0_19] : memref<1x8xf32, #tpu.memory_space<vmem>>, vector<1x8xf32>
    %18 = vector.broadcast %17 : vector<1x8xf32> to vector<256x8xf32>
    %19 = arith.addf %16, %18 : vector<256x8xf32>
    %20 = arith.truncf %19 : vector<256x8xf32> to vector<256x8xbf16>
    %c0_20 = arith.constant 0 : index
    %c0_21 = arith.constant 0 : index
    %c0_22 = arith.constant 0 : index
    %c0_23 = arith.constant 0 : index
    %21 = vector.load %arg5[%c0_20, %c0_21, %c0_22, %c0_23] : memref<1x1x256x8xbf16, #tpu.memory_space<vmem>>, vector<1x1x256x8xbf16>
    %22 = vector.shape_cast %21 : vector<1x1x256x8xbf16> to vector<256x8xbf16>
    %23 = vector.shape_cast %20 : vector<256x8xbf16> to vector<1x1x256x8xbf16>
    tpu.vector_store %arg5[%c0_20, %c0_21, %c0_22, %c0_23], %23 {strides = array<i32>} : memref<1x1x256x8xbf16, #tpu.memory_space<vmem>>, vector<1x1x256x8xbf16>,
    %cst_24 = arith.constant dense<0.000000e+00> : vector<8xf32>
    %24 = vector.multi_reduction <add>, %19, %cst_24 [0] : vector<256x8xf32> to vector<8xf32>
    %25 = vector.shape_cast %24 : vector<8xf32> to vector<1x8xf32>
    %cst_25 = arith.constant 3.906250e-03 : f32
    %26 = vector.broadcast %cst_25 : f32 to vector<1x8xf32>
    %27 = arith.mulf %25, %26 : vector<1x8xf32>
    %28 = vector.broadcast %27 : vector<1x8xf32> to vector<256x8xf32>
    %29 = arith.subf %19, %28 : vector<256x8xf32>
    %c0_26 = arith.constant 0 : index
    %c0_27 = arith.constant 0 : index
    %c0_28 = arith.constant 0 : index
    %c0_29 = arith.constant 0 : index
    %30 = vector.load %arg6[%c0_26, %c0_27, %c0_28, %c0_29] : memref<1x1x2x8xf32, #tpu.memory_space<vmem>>, vector<1x1x1x8xf32>
    %31 = vector.shape_cast %30 : vector<1x1x1x8xf32> to vector<1x8xf32>
    %32 = vector.shape_cast %27 : vector<1x8xf32> to vector<1x1x1x8xf32>
    tpu.vector_store %arg6[%c0_26, %c0_27, %c0_28, %c0_29], %32 {strides = array<i32>} : memref<1x1x2x8xf32, #tpu.memory_space<vmem>>, vector<1x1x1x8xf32>,
    %33 = arith.mulf %29, %29 : vector<256x8xf32>
    %cst_30 = arith.constant dense<0.000000e+00> : vector<8xf32>
    %34 = vector.multi_reduction <add>, %33, %cst_30 [0] : vector<256x8xf32> to vector<8xf32>
    %35 = vector.shape_cast %34 : vector<8xf32> to vector<1x8xf32>
    %c0_31 = arith.constant 0 : index
    %c0_32 = arith.constant 0 : index
    %c1_33 = arith.constant 1 : index
    %c0_34 = arith.constant 0 : index
    %36 = vector.load %arg6[%c0_31, %c0_32, %c1_33, %c0_34] : memref<1x1x2x8xf32, #tpu.memory_space<vmem>>, vector<1x1x1x8xf32>
    %37 = vector.shape_cast %36 : vector<1x1x1x8xf32> to vector<1x8xf32>
    %38 = vector.shape_cast %35 : vector<1x8xf32> to vector<1x1x1x8xf32>
    tpu.vector_store %arg6[%c0_31, %c0_32, %c1_33, %c0_34], %38 {strides = array<i32>} : memref<1x1x2x8xf32, #tpu.memory_space<vmem>>, vector<1x1x1x8xf32>,
    return
  }
  func.func @transform_0(%arg0: i32, %arg1: i32) -> (i32, i32, i32, i32) {
    %c0_i32 = arith.constant 0 : i32
    %c0_i32_0 = arith.constant 0 : i32
    %c0_i32_1 = arith.constant 0 : i32
    return %arg0, %arg1, %c0_i32, %c0_i32_0 : i32, i32, i32, i32
  }
  func.func @transform_1(%arg0: i32, %arg1: i32) -> (i32, i32, i32) {
    %c0_i32 = arith.constant 0 : i32
    %c0_i32_0 = arith.constant 0 : i32
    %c0_i32_1 = arith.constant 0 : i32
    %c0_i32_2 = arith.constant 0 : i32
    return %c0_i32, %c0_i32_0, %c0_i32_1 : i32, i32, i32
  }
  func.func @transform_2(%arg0: i32, %arg1: i32) -> (i32, i32) {
    %c0_i32 = arith.constant 0 : i32
    %c0_i32_0 = arith.constant 0 : i32
    %c0_i32_1 = arith.constant 0 : i32
    return %c0_i32, %c0_i32_0 : i32, i32
  }
  func.func @transform_3(%arg0: i32, %arg1: i32) -> (i32, i32, i32, i32) {
    %c0_i32 = arith.constant 0 : i32
    %c0_i32_0 = arith.constant 0 : i32
    %c0_i32_1 = arith.constant 0 : i32
    return %arg0, %arg1, %c0_i32, %c0_i32_0 : i32, i32, i32, i32
  }
  func.func @transform_4(%arg0: i32, %arg1: i32) -> (i32, i32, i32, i32) {
    %c0_i32 = arith.constant 0 : i32
    %c0_i32_0 = arith.constant 0 : i32
    %c0_i32_1 = arith.constant 0 : i32
    return %arg0, %arg1, %c0_i32, %c0_i32_0 : i32, i32, i32, i32
  }
}

module attributes {stable_mosaic.version = 11 : i64} {
  func.func @_bn_relu_kernel(%arg0: i32, %arg1: i32, %arg2: memref<1x1x256x8xbf16, #tpu.memory_space<vmem>>, %arg3: memref<1x8xf32, #tpu.memory_space<vmem>>, %arg4: memref<1x8xf32, #tpu.memory_space<vmem>>, %arg5: memref<1x1x256x8xf32, #tpu.memory_space<vmem>>) attributes {dimension_semantics = [#tpu.dimension_semantics<parallel>, #tpu.dimension_semantics<parallel>], iteration_bounds = array<i64: 2, 1>, scalar_prefetch = 0 : i64, scratch_operands = 0 : i64, tpu.core_type = #tpu.core_type<tc>, window_params = [{transform_indices = @transform_0, window_bounds = array<i64: 1, 1, 256, 8>}, {pipeline_mode = #tpu.pipeline_mode<synchronous>, transform_indices = @transform_1, window_bounds = array<i64: 1, 8>}, {pipeline_mode = #tpu.pipeline_mode<synchronous>, transform_indices = @transform_2, window_bounds = array<i64: 1, 8>}, {transform_indices = @transform_3, window_bounds = array<i64: 1, 1, 256, 8>}]} {
    %c0 = arith.constant 0 : index
    %c0_0 = arith.constant 0 : index
    %c0_1 = arith.constant 0 : index
    %c0_2 = arith.constant 0 : index
    %0 = vector.load %arg2[%c0, %c0_0, %c0_1, %c0_2] : memref<1x1x256x8xbf16, #tpu.memory_space<vmem>>, vector<1x1x256x8xbf16>
    %1 = vector.shape_cast %0 : vector<1x1x256x8xbf16> to vector<256x8xbf16>
    %2 = arith.extf %1 : vector<256x8xbf16> to vector<256x8xf32>
    %c0_3 = arith.constant 0 : index
    %c0_4 = arith.constant 0 : index
    %3 = vector.load %arg3[%c0_3, %c0_4] : memref<1x8xf32, #tpu.memory_space<vmem>>, vector<1x8xf32>
    %4 = vector.broadcast %3 : vector<1x8xf32> to vector<256x8xf32>
    %5 = arith.mulf %2, %4 : vector<256x8xf32>
    %c0_5 = arith.constant 0 : index
    %c0_6 = arith.constant 0 : index
    %6 = vector.load %arg4[%c0_5, %c0_6] : memref<1x8xf32, #tpu.memory_space<vmem>>, vector<1x8xf32>
    %7 = vector.broadcast %6 : vector<1x8xf32> to vector<256x8xf32>
    %8 = arith.addf %5, %7 : vector<256x8xf32>
    %cst = arith.constant 0.000000e+00 : f32
    %9 = vector.broadcast %cst : f32 to vector<256x8xf32>
    %10 = arith.maximumf %8, %9 : vector<256x8xf32>
    %c0_7 = arith.constant 0 : index
    %c0_8 = arith.constant 0 : index
    %c0_9 = arith.constant 0 : index
    %c0_10 = arith.constant 0 : index
    %11 = vector.load %arg5[%c0_7, %c0_8, %c0_9, %c0_10] : memref<1x1x256x8xf32, #tpu.memory_space<vmem>>, vector<1x1x256x8xf32>
    %12 = vector.shape_cast %11 : vector<1x1x256x8xf32> to vector<256x8xf32>
    %13 = vector.shape_cast %10 : vector<256x8xf32> to vector<1x1x256x8xf32>
    tpu.vector_store %arg5[%c0_7, %c0_8, %c0_9, %c0_10], %13 {strides = array<i32>} : memref<1x1x256x8xf32, #tpu.memory_space<vmem>>, vector<1x1x256x8xf32>,
    return
  }
  func.func @transform_0(%arg0: i32, %arg1: i32) -> (i32, i32, i32, i32) {
    %c0_i32 = arith.constant 0 : i32
    %c0_i32_0 = arith.constant 0 : i32
    %c0_i32_1 = arith.constant 0 : i32
    return %arg0, %arg1, %c0_i32, %c0_i32_0 : i32, i32, i32, i32
  }
  func.func @transform_1(%arg0: i32, %arg1: i32) -> (i32, i32) {
    %c0_i32 = arith.constant 0 : i32
    %c0_i32_0 = arith.constant 0 : i32
    %c0_i32_1 = arith.constant 0 : i32
    return %c0_i32, %c0_i32_0 : i32, i32
  }
  func.func @transform_2(%arg0: i32, %arg1: i32) -> (i32, i32) {
    %c0_i32 = arith.constant 0 : i32
    %c0_i32_0 = arith.constant 0 : i32
    %c0_i32_1 = arith.constant 0 : i32
    return %c0_i32, %c0_i32_0 : i32, i32
  }
  func.func @transform_3(%arg0: i32, %arg1: i32) -> (i32, i32, i32, i32) {
    %c0_i32 = arith.constant 0 : i32
    %c0_i32_0 = arith.constant 0 : i32
    %c0_i32_1 = arith.constant 0 : i32
    return %arg0, %arg1, %c0_i32, %c0_i32_0 : i32, i32, i32, i32
  }
}

</mosaic_0001>

<bundles_post_ra>
// kernel: conv_bn_relu.3
= control target key start
LH: loop header
LB: loop body
LE: loop exit
PB: predicated region body
PF: predicated region fallthrough
CT: control target
= control target key end

     0   :  { %s668_s12 = smov 0   ;;  %s670_s13 = smov 0   ;;  %s863_s0 = inlined_call_operand.vmem [shape: bf16[2,1,256,8], index: 0, kind: input, shape index: {}]   ;;  %s864_s1 = inlined_call_operand.vmem [shape: f32[1,8], index: 1, kind: input, shape index: {}]   ;;  %s865_s2 = inlined_call_operand.vmem [shape: f32[1,8], index: 2, kind: input, shape index: {}]   ;;  %s866_s3 = inlined_call_operand.vmem [shape: f32[2,1,256,8], index: 3, kind: output, shape index: {}]  }
   0x1   :  { %s672_s14 = smov 0  }
   0x2 LB: > { %s25_s15 = sadd.s32 1, %s642_s13  ;;  %p510_p0 = scmp.ge.s32.totalorder %s646_s14, 1  ;;  %s646_s14 = sphi %s672_s14, %s13_s14   ;;  %s642_s13 = sphi %s670_s13, %s868_s13   ;;  %s638_s12 = sphi %s668_s12, %s867_s12  }
   0x3   : > { %p27_p1 = scmp.ge.s32.totalorder %s25_s15, 2  ;;  %p157_p2 = scmp.lt.s32.totalorder %s646_s14, 3 }
   0x5   : > { %s870_s15 = smov (%p27_p1, %s25_s15), 0  ;;  %p158_p3 = pnand %p510_p0, %p157_p2 }
   0x6   : > { %p189_p4 = scmp.lt.s32.totalorder (!%p158_p3), %s638_s12, 1  ;;  %v697_v0 = vld [vmem:[%s864_s1] ss:$0 sm:$0xff] (!%p158_p3)  ;;  %vm381_vm0 = vcmask (!%p158_p3), 64512  }
   0x7   : > { %161 = sbr.rel (%p158_p3) target bundleno = 54 (0x36), region = 32  ;;  %v706_v9 = vld [vmem:[%s865_s2] ss:$0 sm:$0xff] (!%p158_p3) }
   0xe   : > { %s872_s12 = smov (!%p189_p4, %s638_s12), 1 }
   0xf   : > { %s519_s16 = sshll.u32 %s872_s12, 7  ;;  %s520_s24 = sshll.u32 %s872_s12, 8 }
  0x10   : > { %s692_s19 = scalar_lea.vmem %s863_s0, %s519_s16  ;;  %s724_s27 = scalar_lea.vmem %s866_s3, %s520_s24 }
  0x11   : > { %v522_v1 = vld [vmem:[%s692_s19] sm:$0xff]   ;;  %v585_v2 = vld [vmem:[%s692_s19 + $0x8] sm:$0xff]   ;;  %v586_v3 = vld [vmem:[%s692_s19 + $0x10] sm:$0xff]  }
  0x12   : > { %v523_v4 = vunpack.c.l.bf16 %v522_v1  ;;  %v524_v5 = vunpack.c.h.bf16 %v522_v1  ;;  %v527_v6 = vunpack.c.l.bf16 %v585_v2  ;;  %v528_v7 = vunpack.c.h.bf16 %v585_v2  ;;  %v587_v8 = vld [vmem:[%s692_s19 + $0x18] sm:$0xff]   ;;  %v588_v30 = vld [vmem:[%s692_s19 + $0x20] sm:$0xff]   ;;  %v589_v31 = vld [vmem:[%s692_s19 + $0x28] sm:$0xff]  }
  0x13   : > { %v531_v10 = vunpack.c.l.bf16 %v586_v3  ;;  %v532_v11 = vunpack.c.h.bf16 %v586_v3  ;;  %v535_v12 = vunpack.c.l.bf16 %v587_v8  ;;  %v536_v13 = vunpack.c.h.bf16 %v587_v8  ;;  %v590_v36 = vld [vmem:[%s692_s19 + $0x30] sm:$0xff]   ;;  %v591_v37 = vld [vmem:[%s692_s19 + $0x38] sm:$0xff]   ;;  %v592_v3 = vld [vmem:[%s692_s19 + $0x40] sm:$0xff]  }
  0x14   : > { %v278_v14 = vmul.f32 %v523_v4, %v697_v0  ;;  %v279_v15 = vmul.f32 %v524_v5, %v697_v0  ;;  %v280_v16 = vmul.f32 %v527_v6, %v697_v0  ;;  %v281_v17 = vmul.f32 %v528_v7, %v697_v0  ;;  %v593_v4 = vld [vmem:[%s692_s19 + $0x48] sm:$0xff]  }
  0x15   : > { %v282_v18 = vmul.f32 %v531_v10, %v697_v0  ;;  %v283_v19 = vmul.f32 %v532_v11, %v697_v0  ;;  %v284_v20 = vmul.f32 %v535_v12, %v697_v0  ;;  %v285_v21 = vmul.f32 %v536_v13, %v697_v0  ;;  %v594_v10 = vld [vmem:[%s692_s19 + $0x50] sm:$0xff]   ;;  %v595_v11 = vld [vmem:[%s692_s19 + $0x58] sm:$0xff]  }
  0x16   : > { %v317_v22 = vadd.f32 %v706_v9, %v278_v14  ;;  %v318_v23 = vadd.f32 %v706_v9, %v279_v15  ;;  %v319_v24 = vadd.f32 %v706_v9, %v280_v16  ;;  %v320_v25 = vadd.f32 %v706_v9, %v281_v17 }
  0x17   : > { %v321_v26 = vadd.f32 %v706_v9, %v282_v18  ;;  %v322_v27 = vadd.f32 %v706_v9, %v283_v19  ;;  %v323_v28 = vadd.f32 %v706_v9, %v284_v20  ;;  %v324_v29 = vadd.f32 %v706_v9, %v285_v21 }
  0x18   : > { %v349_v32 = vmax.f32 %v317_v22, 0.0  ;;  %v350_v33 = vmax.f32 %v318_v23, 0.0  ;;  %v351_v34 = vmax.f32 %v319_v24, 0.0  ;;  %v352_v35 = vmax.f32 %v320_v25, 0.0 }
  0x19   : > { %v353_v38 = vmax.f32 %v321_v26, 0.0  ;;  %v354_v39 = vmax.f32 %v322_v27, 0.0  ;;  %v355_v40 = vmax.f32 %v323_v28, 0.0  ;;  %v356_v41 = vmax.f32 %v324_v29, 0.0 }
  0x1a   : > { %382 = vst.msk [vmem:[%s724_s27] sm:$0xff] %vm381_vm0, %v349_v32  ;;  %383 = vst.msk [vmem:[%s724_s27 + $0x8] sm:$0xff] %vm381_vm0, %v350_v33  ;;  %v539_v42 = vunpack.c.l.bf16 %v588_v30  ;;  %v540_v43 = vunpack.c.h.bf16 %v588_v30  ;;  %v543_v44 = vunpack.c.l.bf16 %v589_v31  ;;  %v544_v45 = vunpack.c.h.bf16 %v589_v31 }
  0x1b   : > { %384 = vst.msk [vmem:[%s724_s27 + $0x10] sm:$0xff] %vm381_vm0, %v351_v34  ;;  %385 = vst.msk [vmem:[%s724_s27 + $0x18] sm:$0xff] %vm381_vm0, %v352_v35  ;;  %v547_v46 = vunpack.c.l.bf16 %v590_v36  ;;  %v548_v47 = vunpack.c.h.bf16 %v590_v36  ;;  %v551_v48 = vunpack.c.l.bf16 %v591_v37  ;;  %v552_v49 = vunpack.c.h.bf16 %v591_v37 }
  0x1c   : > { %386 = vst.msk [vmem:[%s724_s27 + $0x20] sm:$0xff] %vm381_vm0, %v353_v38  ;;  %387 = vst.msk [vmem:[%s724_s27 + $0x28] sm:$0xff] %vm381_vm0, %v354_v39  ;;  %v286_v50 = vmul.f32 %v539_v42, %v697_v0  ;;  %v287_v51 = vmul.f32 %v540_v43, %v697_v0  ;;  %v288_v52 = vmul.f32 %v543_v44, %v697_v0  ;;  %v555_v16 = vunpack.c.l.bf16 %v592_v3 }
  0x1d   : > { %388 = vst.msk [vmem:[%s724_s27 + $0x30] sm:$0xff] %vm381_vm0, %v355_v40  ;;  %389 = vst.msk [vmem:[%s724_s27 + $0x38] sm:$0xff] %vm381_vm0, %v356_v41  ;;  %v289_v53 = vmul.f32 %v544_v45, %v697_v0  ;;  %v290_v54 = vmul.f32 %v547_v46, %v697_v0  ;;  %v291_v55 = vmul.f32 %v548_v47, %v697_v0  ;;  %v556_v17 = vunpack.c.h.bf16 %v592_v3  ;;  %v596_v40 = vld [vmem:[%s692_s19 + $0x60] sm:$0xff]   ;;  %v597_v41 = vld [vmem:[%s692_s19 + $0x68] sm:$0xff]  }
  0x1e   : > { %v292_v56 = vmul.f32 %v551_v48, %v697_v0  ;;  %v293_v57 = vmul.f32 %v552_v49, %v697_v0  ;;  %v325_v58 = vadd.f32 %v706_v9, %v286_v50  ;;  %v326_v59 = vadd.f32 %v706_v9, %v287_v51  ;;  %v598_v46 = vld [vmem:[%s692_s19 + $0x70] sm:$0xff]   ;;  %v599_v47 = vld [vmem:[%s692_s19 + $0x78] sm:$0xff]  }
  0x1f   : > { %v327_v60 = vadd.f32 %v706_v9, %v288_v52  ;;  %v328_v61 = vadd.f32 %v706_v9, %v289_v53  ;;  %v329_v62 = vadd.f32 %v706_v9, %v290_v54  ;;  %v330_v63 = vadd.f32 %v706_v9, %v291_v55 }
  0x20   : > { %v331_v1 = vadd.f32 %v706_v9, %v292_v56  ;;  %v332_v2 = vadd.f32 %v706_v9, %v293_v57  ;;  %v357_v5 = vmax.f32 %v325_v58, 0.0  ;;  %v358_v6 = vmax.f32 %v326_v59, 0.0 }
  0x21   : > { %v359_v7 = vmax.f32 %v327_v60, 0.0  ;;  %v360_v8 = vmax.f32 %v328_v61, 0.0  ;;  %v361_v12 = vmax.f32 %v329_v62, 0.0  ;;  %v362_v13 = vmax.f32 %v330_v63, 0.0 }
  0x22   : > { %v363_v14 = vmax.f32 %v331_v1, 0.0  ;;  %v364_v15 = vmax.f32 %v332_v2, 0.0  ;;  %390 = vst.msk [vmem:[%s724_s27 + $0x40] sm:$0xff] %vm381_vm0, %v357_v5  ;;  %391 = vst.msk [vmem:[%s724_s27 + $0x48] sm:$0xff] %vm381_vm0, %v358_v6  ;;  %v559_v18 = vunpack.c.l.bf16 %v593_v4  ;;  %v560_v19 = vunpack.c.h.bf16 %v593_v4 }
  0x23   : > { %392 = vst.msk [vmem:[%s724_s27 + $0x50] sm:$0xff] %vm381_vm0, %v359_v7  ;;  %393 = vst.msk [vmem:[%s724_s27 + $0x58] sm:$0xff] %vm381_vm0, %v360_v8  ;;  %v563_v20 = vunpack.c.l.bf16 %v594_v10  ;;  %v564_v21 = vunpack.c.h.bf16 %v594_v10  ;;  %v567_v22 = vunpack.c.l.bf16 %v595_v11  ;;  %v568_v23 = vunpack.c.h.bf16 %v595_v11 }
  0x24   : > { %394 = vst.msk [vmem:[%s724_s27 + $0x60] sm:$0xff] %vm381_vm0, %v361_v12  ;;  %395 = vst.msk [vmem:[%s724_s27 + $0x68] sm:$0xff] %vm381_vm0, %v362_v13  ;;  %v294_v24 = vmul.f32 %v555_v16, %v697_v0  ;;  %v295_v25 = vmul.f32 %v556_v17, %v697_v0  ;;  %v296_v26 = vmul.f32 %v559_v18, %v697_v0  ;;  %v571_v52 = vunpack.c.l.bf16 %v596_v40 }
  0x25   : > { %396 = vst.msk [vmem:[%s724_s27 + $0x70] sm:$0xff] %vm381_vm0, %v363_v14  ;;  %397 = vst.msk [vmem:[%s724_s27 + $0x78] sm:$0xff] %vm381_vm0, %v364_v15  ;;  %v297_v27 = vmul.f32 %v560_v19, %v697_v0  ;;  %v298_v28 = vmul.f32 %v563_v20, %v697_v0  ;;  %v299_v29 = vmul.f32 %v564_v21, %v697_v0  ;;  %v572_v53 = vunpack.c.h.bf16 %v596_v40 }
  0x26   : > { %v300_v30 = vmul.f32 %v567_v22, %v697_v0  ;;  %v301_v31 = vmul.f32 %v568_v23, %v697_v0  ;;  %v333_v32 = vadd.f32 %v706_v9, %v294_v24  ;;  %v334_v33 = vadd.f32 %v706_v9, %v295_v25 }
  0x27   : > { %v335_v34 = vadd.f32 %v706_v9, %v296_v26  ;;  %v336_v35 = vadd.f32 %v706_v9, %v297_v27  ;;  %v337_v36 = vadd.f32 %v706_v9, %v298_v28  ;;  %v338_v37 = vadd.f32 %v706_v9, %v299_v29 }
  0x28   : > { %v339_v38 = vadd.f32 %v706_v9, %v300_v30  ;;  %v340_v39 = vadd.f32 %v706_v9, %v301_v31  ;;  %v365_v42 = vmax.f32 %v333_v32, 0.0  ;;  %v366_v43 = vmax.f32 %v334_v33, 0.0 }
  0x29   : > { %v367_v44 = vmax.f32 %v335_v34, 0.0  ;;  %v368_v45 = vmax.f32 %v336_v35, 0.0  ;;  %v369_v48 = vmax.f32 %v337_v36, 0.0  ;;  %v370_v49 = vmax.f32 %v338_v37, 0.0 }
  0x2a   : > { %v371_v50 = vmax.f32 %v339_v38, 0.0  ;;  %v372_v51 = vmax.f32 %v340_v39, 0.0  ;;  %398 = vst.msk [vmem:[%s724_s27 + $0x80] sm:$0xff] %vm381_vm0, %v365_v42  ;;  %399 = vst.msk [vmem:[%s724_s27 + $0x88] sm:$0xff] %vm381_vm0, %v366_v43  ;;  %v575_v54 = vunpack.c.l.bf16 %v597_v41  ;;  %v576_v55 = vunpack.c.h.bf16 %v597_v41 }
  0x2b   : > { %400 = vst.msk [vmem:[%s724_s27 + $0x90] sm:$0xff] %vm381_vm0, %v367_v44  ;;  %401 = vst.msk [vmem:[%s724_s27 + $0x98] sm:$0xff] %vm381_vm0, %v368_v45  ;;  %v579_v56 = vunpack.c.l.bf16 %v598_v46  ;;  %v580_v57 = vunpack.c.h.bf16 %v598_v46  ;;  %v583_v58 = vunpack.c.l.bf16 %v599_v47  ;;  %v584_v59 = vunpack.c.h.bf16 %v599_v47 }
  0x2c   : > { %402 = vst.msk [vmem:[%s724_s27 + $0xa0] sm:$0xff] %vm381_vm0, %v369_v48  ;;  %403 = vst.msk [vmem:[%s724_s27 + $0xa8] sm:$0xff] %vm381_vm0, %v370_v49  ;;  %v302_v60 = vmul.f32 %v571_v52, %v697_v0  ;;  %v303_v61 = vmul.f32 %v572_v53, %v697_v0  ;;  %v304_v62 = vmul.f32 %v575_v54, %v697_v0 }
  0x2d   : > { %404 = vst.msk [vmem:[%s724_s27 + $0xb0] sm:$0xff] %vm381_vm0, %v371_v50  ;;  %405 = vst.msk [vmem:[%s724_s27 + $0xb8] sm:$0xff] %vm381_vm0, %v372_v51  ;;  %v305_v63 = vmul.f32 %v576_v55, %v697_v0  ;;  %v306_v1 = vmul.f32 %v579_v56, %v697_v0  ;;  %v307_v2 = vmul.f32 %v580_v57, %v697_v0 }
  0x2e   : > { %v308_v3 = vmul.f32 %v583_v58, %v697_v0  ;;  %v309_v4 = vmul.f32 %v584_v59, %v697_v0  ;;  %v341_v5 = vadd.f32 %v706_v9, %v302_v60  ;;  %v342_v6 = vadd.f32 %v706_v9, %v303_v61 }
  0x2f   : > { %v343_v7 = vadd.f32 %v706_v9, %v304_v62  ;;  %v344_v8 = vadd.f32 %v706_v9, %v305_v63  ;;  %v345_v10 = vadd.f32 %v706_v9, %v306_v1  ;;  %v346_v11 = vadd.f32 %v706_v9, %v307_v2 }
  0x30   : > { %v347_v0 = vadd.f32 %v706_v9, %v308_v3  ;;  %v348_v12 = vadd.f32 %v706_v9, %v309_v4  ;;  %v373_v13 = vmax.f32 %v341_v5, 0.0  ;;  %v374_v14 = vmax.f32 %v342_v6, 0.0 }
  0x31   : > { %v375_v15 = vmax.f32 %v343_v7, 0.0  ;;  %v376_v16 = vmax.f32 %v344_v8, 0.0  ;;  %v377_v17 = vmax.f32 %v345_v10, 0.0  ;;  %v378_v18 = vmax.f32 %v346_v11, 0.0 }
  0x32   : > { %v379_v19 = vmax.f32 %v347_v0, 0.0  ;;  %v380_v20 = vmax.f32 %v348_v12, 0.0  ;;  %406 = vst.msk [vmem:[%s724_s27 + $0xc0] sm:$0xff] %vm381_vm0, %v373_v13  ;;  %407 = vst.msk [vmem:[%s724_s27 + $0xc8] sm:$0xff] %vm381_vm0, %v374_v14 }
  0x33   : > { %408 = vst.msk [vmem:[%s724_s27 + $0xd0] sm:$0xff] %vm381_vm0, %v375_v15  ;;  %409 = vst.msk [vmem:[%s724_s27 + $0xd8] sm:$0xff] %vm381_vm0, %v376_v16 }
  0x34   : > { %410 = vst.msk [vmem:[%s724_s27 + $0xe0] sm:$0xff] %vm381_vm0, %v377_v17  ;;  %411 = vst.msk [vmem:[%s724_s27 + $0xe8] sm:$0xff] %vm381_vm0, %v378_v18 }
  0x35   : > { %412 = vst.msk [vmem:[%s724_s27 + $0xf0] sm:$0xff] %vm381_vm0, %v379_v19  ;;  %413 = vst.msk [vmem:[%s724_s27 + $0xf8] sm:$0xff] %vm381_vm0, %v380_v20 }
  0x36 PF: > { %s13_s14 = sadd.s32 1, %s646_s14   ;;  %s867_s12 = smov %s642_s13 }
  0x37   : > { %p10_p5 = scmp.ge.s32.totalorder %s13_s14, 4   ;;  %s868_s13 = smov %s870_s15 }
  0x39   :  { %12 = sbr.rel (!%p10_p5) target bundleno = 2 (0x2), region = 62 }

// kernel: conv_bn_relu.2
= control target key start
LH: loop header
LB: loop body
LE: loop exit
PB: predicated region body
PF: predicated region fallthrough
CT: control target
= control target key end

     0   :  { %s2171_s15 = smov 0   ;;  %s2173_s16 = smov 0   ;;  %s2752_s0 = inlined_call_operand.vmem [shape: bf16[2,1,288,12], index: 0, kind: input, shape index: {}]   ;;  %s2753_s1 = inlined_call_operand.vmem [shape: bf16[3,12,8], index: 1, kind: input, shape index: {}]   ;;  %s2754_s2 = inlined_call_operand.vmem [shape: f32[1,8], index: 2, kind: input, shape index: {}]   ;;  %s2755_s3 = inlined_call_operand.vmem [shape: bf16[2,1,256,8], index: 3, kind: output, shape index: {0}]   ;;  %s2756_s4 = inlined_call_operand.vmem [shape: f32[2,1,2,8], index: 4, kind: output, shape index: {1}]  }
   0x1   :  { %s2175_s17 = smov 0  }
   0x2 LB: > { %s27_s18 = sadd.s32 1, %s2140_s16  ;;  %p1677_p0 = scmp.ge.s32.totalorder %s2144_s17, 1  ;;  %s2144_s17 = sphi %s2175_s17, %s15_s17   ;;  %s2140_s16 = sphi %s2173_s16, %s2758_s16   ;;  %s2136_s15 = sphi %s2171_s15, %s2757_s15  }
   0x3   : > { %p29_p1 = scmp.ge.s32.totalorder %s27_s18, 2  ;;  %p187_p2 = scmp.lt.s32.totalorder %s2144_s17, 3 }
   0x5   : > { %s2760_s18 = smov (%p29_p1, %s27_s18), 0  ;;  %p188_p3 = pnand %p1677_p0, %p187_p2 }
   0x6   : > { %v2086_v0 = vld [vmem:[%s2753_s1 + $0x8] sm:$0x3f] (!%p188_p3)   ;;  %vm427_vm0 = vcmask (!%p188_p3), 1045504   ;;  %p228_p4 = scmp.lt.s32.totalorder (!%p188_p3), %s2136_s15, 1  ;;  %v2087_v1 = vld [vmem:[%s2753_s1] sm:$0x3f] (!%p188_p3)  }
   0x7   : > { %191 = sbr.rel (%p188_p3) target bundleno = 433 (0x1b1), region = 32  ;;  %2057 = vmatprep.subr.msk.bf16.mxu1 (!%p188_p3), %vm427_vm0, %v2086_v0  ;;  %v429_v2 = vsel (!%p188_p3), %vm427_vm0, %v2086_v0, 0  ;;  %v2090_v3 = vld [vmem:[%s2753_s1 + $0x10] sm:$0x3f] (!%p188_p3)   ;;  %2058 = vmatprep.subr.msk.bf16.mxu0 (!%p188_p3), %vm427_vm0, %v2087_v1  ;;  %v606_v4 = vsel (!%p188_p3), %vm427_vm0, %v2087_v1, 0  ;;  %vm378_vm1 = vcmask (!%p188_p3), 97280  }
   0x8   : > { %1890 = vmatpush3.bf16.msra.mxu1 (!%p188_p3), %v429_v2  ;;  %1924 = vmatpush3.bf16.msra.mxu0 (!%p188_p3), %v606_v4  ;;  %v938_v8 = vsel (!%p188_p3), %vm427_vm0, %v2090_v3, 0  ;;  %v2313_v56 = vld [vmem:[%s2754_s2] ss:$0 sm:$0xff] (!%p188_p3)  ;;  %vm1300_vm2 = vcmask (!%p188_p3), 60416   ;;  %vm1333_vm3 = vcmask (!%p188_p3), 64512   ;;  %vm1436_vm4 = vcmask (!%p188_p3), 57344  }
   0x9   : > { %2059 = vmatprep.subr.msk.bf16.mxu1 (!%p188_p3), %vm427_vm0, %v2087_v1  ;;  %2060 = vmatprep.subr.msk.bf16.mxu0 (!%p188_p3), %vm427_vm0, %v2090_v3 }
   0xe   : > { %s2762_s15 = smov (!%p228_p4, %s2136_s15), 1 }
   0xf   : > { %s2061_s25 = smul.u32 144, %s2762_s15  ;;  %s1805_s5 = sshll.u32 %s2762_s15, 7 }
  0x10   : > { %s2322_s8 = scalar_lea.vmem %s2755_s3, %s1805_s5  ;;  %s1681_s9 = sshll.u32 %s2762_s15, 1 }
  0x11   : > { %s2210_s28 = scalar_lea.vmem %s2752_s0, %s2061_s25  ;;  %s2601_s12 = scalar_lea.vmem %s2756_s4, %s1681_s9 }
  0x12   : > { %v2088_v5 = vld [vmem:[%s2210_s28 + $0x8] sm:$0xff]   ;;  %v2089_v6 = vld [vmem:[%s2210_s28] sm:$0xff]   ;;  %v2091_v7 = vld [vmem:[%s2210_s28 + $0x10] sm:$0xff]  }
  0x13   : > { %1891 = vmatprep.mubr.msk.bf16.mxu1 %vm378_vm1, %v2088_v5  ;;  %1925 = vmatprep.mubr.msk.bf16.mxu0 %vm378_vm1, %v2089_v6  ;;  %v2092_v9 = vld [vmem:[%s2210_s28 + $0x18] sm:$0xff]   ;;  %v2093_v10 = vld [vmem:[%s2210_s28 + $0x20] sm:$0xff]   ;;  %v2094_v11 = vld [vmem:[%s2210_s28 + $0x28] sm:$0xff]  }
  0x14   : > { %1892 = vmatmul.mubr.msk.bf16.vlgmr.msra.gmra.mrb[0].mxu1 %vm378_vm1, %v2091_v7  ;;  %1926 = vmatmul.mubr.msk.bf16.vlgmr.msra.gmra.mrb[0].mxu0 %vm378_vm1, %v2088_v5  ;;  %v2095_v12 = vld [vmem:[%s2210_s28 + $0x30] sm:$0xff]   ;;  %v2096_v13 = vld [vmem:[%s2210_s28 + $0x38] sm:$0xff]   ;;  %v2097_v14 = vld [vmem:[%s2210_s28 + $0x40] sm:$0xff]  }
  0x15   : > { %1992 = vmatpush3.bf16.msra.mxu1 %v606_v4  ;;  %1958 = vmatpush3.bf16.msra.mxu0 %v938_v8  ;;  %v2098_v15 = vld [vmem:[%s2210_s28 + $0x48] sm:$0xff]   ;;  %v2099_v16 = vld [vmem:[%s2210_s28 + $0x10] sm:$0xff]   ;;  %v2101_v18 = vld [vmem:[%s2210_s28 + $0x18] sm:$0xff]  }
  0x16   : > { %1895 = vmatprep.mubr.msk.bf16.mxu1 %vm378_vm1, %v2092_v9  ;;  %1929 = vmatprep.mubr.msk.bf16.mxu0 %vm378_vm1, %v2091_v7  ;;  %v2100_v17 = vld [vmem:[%s2210_s28 + $0x50] sm:$0xff]   ;;  %v2102_v19 = vld [vmem:[%s2210_s28 + $0x58] sm:$0xff]   ;;  %v2103_v20 = vld [vmem:[%s2210_s28 + $0x20] sm:$0xff]  }
  0x17   : > { %v2104_v21 = vld [vmem:[%s2210_s28 + $0x60] sm:$0xff]   ;;  %v2105_v22 = vld [vmem:[%s2210_s28 + $0x28] sm:$0xff]   ;;  %v2107_v24 = vld [vmem:[%s2210_s28 + $0x30] sm:$0xff]  }
  0x18   : > { %v2106_v23 = vld [vmem:[%s2210_s28 + $0x68] sm:$0xff]   ;;  %v2108_v25 = vld [vmem:[%s2210_s28 + $0x70] sm:$0xff]   ;;  %v2109_v26 = vld [vmem:[%s2210_s28 + $0x38] sm:$0xff]  }
  0x19   : > { %v2110_v27 = vld [vmem:[%s2210_s28 + $0x78] sm:$0xff]   ;;  %v2111_v28 = vld [vmem:[%s2210_s28 + $0x40] sm:$0xff]   ;;  %v2113_v30 = vld [vmem:[%s2210_s28 + $0x48] sm:$0xff]  }
  0x1a   : > { %v2112_v29 = vld [vmem:[%s2210_s28 + $0x80] sm:$0xff]   ;;  %v2114_v31 = vld [vmem:[%s2210_s28 + $0x50] sm:$0xff]   ;;  %v2115_v32 = vld [vmem:[%s2210_s28 + $0x58] sm:$0xff]  }
  0x1b   : > { %v2116_v33 = vld [vmem:[%s2210_s28 + $0x60] sm:$0xff]   ;;  %v2117_v34 = vld [vmem:[%s2210_s28 + $0x68] sm:$0xff]   ;;  %v2118_v35 = vld [vmem:[%s2210_s28 + $0x70] sm:$0xff]  }
  0x1c   : > { %1896 = vmatmul.mubr.msk.bf16.gmra.mrb[4].mxu1 %vm378_vm1, %v2093_v10  ;;  %1930 = vmatmul.mubr.msk.bf16.gmra.mrb[4].mxu0 %vm378_vm1, %v2092_v9  ;;  %v2119_v36 = vld [vmem:[%s2210_s28 + $0x78] sm:$0xff]   ;;  %v2120_v37 = vld [vmem:[%s2210_s28 + $0x80] sm:$0xff]   ;;  %v2121_v38 = vld [vmem:[%s2210_s28 + $0x88] sm:$0xff]  }
  0x1d   : > { %1899 = vmatprep.mubr.msk.bf16.mxu1 %vm378_vm1, %v2094_v11  ;;  %1933 = vmatprep.mubr.msk.bf16.mxu0 %vm378_vm1, %v2093_v10 }
  0x24   : > { %1900 = vmatmul.mubr.msk.bf16.gmra.mrb[8].mxu1 %vm378_vm1, %v2095_v12  ;;  %1934 = vmatmul.mubr.msk.bf16.gmra.mrb[8].mxu0 %vm378_vm1, %v2094_v11 }
  0x25   : > { %1903 = vmatprep.mubr.msk.bf16.mxu1 %vm378_vm1, %v2096_v13  ;;  %1937 = vmatprep.mubr.msk.bf16.mxu0 %vm378_vm1, %v2095_v12 }
  0x2c   : > { %1904 = vmatmul.mubr.msk.bf16.gmra.mrb[12].mxu1 %vm378_vm1, %v2097_v14  ;;  %1938 = vmatmul.mubr.msk.bf16.gmra.mrb[12].mxu0 %vm378_vm1, %v2096_v13 }
  0x2d   : > { %1907 = vmatprep.mubr.msk.bf16.mxu1 %vm378_vm1, %v2098_v15  ;;  %1959 = vmatprep.mubr.msk.bf16.mxu0 %vm378_vm1, %v2099_v16 }
  0x34   : > { %1908 = vmatmul.mubr.msk.bf16.gmra.mrb[16].mxu1 %vm378_vm1, %v2100_v17  ;;  %1960 = vmatmul.mubr.msk.bf16.vlgmr.msra.gmra.mrb[0].mxu0 %vm378_vm1, %v2101_v18 }
  0x35   : > { %1911 = vmatprep.mubr.msk.bf16.mxu1 %vm378_vm1, %v2102_v19  ;;  %1963 = vmatprep.mubr.msk.bf16.mxu0 %vm378_vm1, %v2103_v20 }
  0x3c   : > { %1912 = vmatmul.mubr.msk.bf16.gmra.mrb[20].mxu1 %vm378_vm1, %v2104_v21  ;;  %1964 = vmatmul.mubr.msk.bf16.gmra.mrb[4].mxu0 %vm378_vm1, %v2105_v22 }
  0x3d   : > { %1915 = vmatprep.mubr.msk.bf16.mxu1 %vm378_vm1, %v2106_v23  ;;  %1967 = vmatprep.mubr.msk.bf16.mxu0 %vm378_vm1, %v2107_v24 }
  0x44   : > { %1916 = vmatmul.mubr.msk.bf16.gmra.mrb[24].mxu1 %vm378_vm1, %v2108_v25  ;;  %1968 = vmatmul.mubr.msk.bf16.gmra.mrb[8].mxu0 %vm378_vm1, %v2109_v26 }
  0x45   : > { %1919 = vmatprep.mubr.msk.bf16.mxu1 %vm378_vm1, %v2110_v27  ;;  %1971 = vmatprep.mubr.msk.bf16.mxu0 %vm378_vm1, %v2111_v28 }
  0x4c   : > { %1920 = vmatmul.mubr.msk.bf16.gmra.mrb[28].mxu1 %vm378_vm1, %v2112_v29  ;;  %1972 = vmatmul.mubr.msk.bf16.gmra.mrb[12].mxu0 %vm378_vm1, %v2113_v30 }
  0x4d   : > { %1941 = vmatprep.mubr.msk.bf16.mxu1 %vm378_vm1, %v2097_v14  ;;  %1975 = vmatprep.mubr.msk.bf16.mxu0 %vm378_vm1, %v2114_v31 }
  0x54   : > { %1942 = vmatmul.mubr.msk.bf16.vlgmr.msra.gmra.mrb[16].mxu1 %vm378_vm1, %v2098_v15  ;;  %1976 = vmatmul.mubr.msk.bf16.gmra.mrb[16].mxu0 %vm378_vm1, %v2115_v32 }
  0x55   : > { %1945 = vmatprep.mubr.msk.bf16.mxu1 %vm378_vm1, %v2100_v17  ;;  %1979 = vmatprep.mubr.msk.bf16.mxu0 %vm378_vm1, %v2116_v33 }
  0x5c   : > { %1946 = vmatmul.mubr.msk.bf16.gmra.mrb[20].mxu1 %vm378_vm1, %v2102_v19  ;;  %1980 = vmatmul.mubr.msk.bf16.gmra.mrb[20].mxu0 %vm378_vm1, %v2117_v34 }
  0x5d   : > { %1949 = vmatprep.mubr.msk.bf16.mxu1 %vm378_vm1, %v2104_v21  ;;  %1983 = vmatprep.mubr.msk.bf16.mxu0 %vm378_vm1, %v2118_v35 }
  0x64   : > { %1950 = vmatmul.mubr.msk.bf16.gmra.mrb[24].mxu1 %vm378_vm1, %v2106_v23  ;;  %1984 = vmatmul.mubr.msk.bf16.gmra.mrb[24].mxu0 %vm378_vm1, %v2119_v36 }
  0x65   : > { %1953 = vmatprep.mubr.msk.bf16.mxu1 %vm378_vm1, %v2108_v25  ;;  %1987 = vmatprep.mubr.msk.bf16.mxu0 %vm378_vm1, %v2120_v37 }
  0x6c   : > { %1954 = vmatmul.mubr.msk.bf16.gmra.mrb[28].mxu1 %vm378_vm1, %v2110_v27  ;;  %1988 = vmatmul.mubr.msk.bf16.gmra.mrb[28].mxu0 %vm378_vm1, %v2121_v38 }
  0xe7   : > { %v1893_v39 = vpop.f32.mrb[0].mxu1 }
  0xe8   : > { %v465_v40 = vpop.f32.mrb[1].mxu1 }
  0xe9   : > { %v1894_v41 = vpop.f32.mrb[2].mxu1 }
  0xea   : > { %v468_v42 = vpop.f32.mrb[3].mxu1 }
  0xef   : > { %v1897_v43 = vpop.f32.mrb[4].mxu1 }
  0xf0   : > { %v481_v44 = vpop.f32.mrb[5].mxu1 }
  0xf1   : > { %v1898_v45 = vpop.f32.mrb[6].mxu1 }
  0xf2   : > { %v484_v46 = vpop.f32.mrb[7].mxu1 }
  0xf7   : > { %v2294_v47 = vpop.f32.mrb[8].mxu1 }
  0xf8   : > { %v2296_v48 = vpop.f32.mrb[9].mxu1 }
  0xf9   : > { %v2298_v49 = vpop.f32.mrb[10].mxu1 }
  0xfa   : > { %v2300_v50 = vpop.f32.mrb[11].mxu1 }
  0xff   : > { %v2302_v51 = vpop.f32.mrb[12].mxu1 }
 0x100   : > { %v2304_v52 = vpop.f32.mrb[13].mxu1 }
 0x101   : > { %v2306_v53 = vpop.f32.mrb[14].mxu1 }
 0x102   : > { %v2308_v54 = vpop.f32.mrb[15].mxu1 }
 0x107   : > { %v1961_v55 = vpop.f32.mrb[0].mxu0 }
 0x108   : > { %v1993_v57 = vadd.f32 %v1961_v55, %v1893_v39  ;;  %v974_v58 = vpop.f32.mrb[1].mxu0 }
 0x109   : > { %v1994_v59 = vadd.f32 %v974_v58, %v465_v40  ;;  %v1962_v60 = vpop.f32.mrb[2].mxu0 }
 0x10a   : > { %v2317_v61 = vadd.f32 %v1993_v57, %v2313_v56  ;;  %v1995_v62 = vadd.f32 %v1962_v60, %v1894_v41  ;;  %v977_v63 = vpop.f32.mrb[3].mxu0 }
 0x10b   : > { %v2325_v0 = vadd.f32 %v1994_v59, %v2313_v56  ;;  %v1996_v1 = vadd.f32 %v977_v63, %v468_v42 }
 0x10c   : > { %v1808_v2 = vpack.c.bf16 %v2317_v61, %v2317_v61  ;;  %v2330_v3 = vadd.f32 %v1995_v62, %v2313_v56  ;;  %v1337_v14 = vsel %vm1333_vm3, %v2317_v61, 0.0 }
 0x10d   : > { %v1806_v4 = vpack.c.bf16 %v2325_v0, %v2325_v0  ;;  %v2335_v5 = vadd.f32 %v1996_v1, %v2313_v56  ;;  %v1334_v7 = vsel %vm1333_vm3, %v2325_v0, 0.0 }
 0x10e   : > { %1303 = vst.msk [vmem:[%s2322_s8 + $0x8] sm:$0xf] %vm1300_vm2, %v1808_v2  ;;  %v1809_v6 = vpack.c.bf16 %v2330_v3, %v2330_v3  ;;  %v1339_v21 = vsel %vm1333_vm3, %v2330_v3, 0.0 }
 0x10f   : > { %1301 = vst.msk [vmem:[%s2322_s8] sm:$0xf] %vm1300_vm2, %v1806_v4  ;;  %v1807_v8 = vpack.c.bf16 %v2335_v5, %v2335_v5  ;;  %v1335_v9 = vsel %vm1333_vm3, %v2335_v5, 0.0  ;;  %v1965_v10 = vpop.f32.mrb[4].mxu0 }
 0x110   : > { %1304 = vst.msk [vmem:[%s2322_s8 + $0xc] sm:$0xf] %vm1300_vm2, %v1809_v6  ;;  %v1336_v11 = vadd.f32 %v1335_v9, %v1334_v7  ;;  %v1997_v12 = vadd.f32 %v1965_v10, %v1897_v43  ;;  %v990_v13 = vpop.f32.mrb[5].mxu0 }
 0x111   : > { %1302 = vst.msk [vmem:[%s2322_s8 + $0x4] sm:$0xf] %vm1300_vm2, %v1807_v8  ;;  %v1998_v15 = vadd.f32 %v990_v13, %v481_v44  ;;  %v1966_v16 = vpop.f32.mrb[6].mxu0 }
 0x112   : > { %v1338_v17 = vadd.f32 %v1337_v14, %v1336_v11  ;;  %v2356_v18 = vadd.f32 %v1997_v12, %v2313_v56  ;;  %v1999_v19 = vadd.f32 %v1966_v16, %v1898_v45  ;;  %v993_v20 = vpop.f32.mrb[7].mxu0 }
 0x113   : > { %v2361_v22 = vadd.f32 %v1998_v15, %v2313_v56  ;;  %v2000_v23 = vadd.f32 %v993_v20, %v484_v46 }
 0x114   : > { %v1812_v24 = vpack.c.bf16 %v2356_v18, %v2356_v18  ;;  %v1340_v25 = vadd.f32 %v1339_v21, %v1338_v17  ;;  %v2366_v26 = vadd.f32 %v1999_v19, %v2313_v56  ;;  %v1345_v38 = vsel %vm1333_vm3, %v2356_v18, 0.0 }
 0x115   : > { %v1810_v27 = vpack.c.bf16 %v2361_v22, %v2361_v22  ;;  %v1341_v28 = vsel %vm1333_vm3, %v2361_v22, 0.0  ;;  %v2373_v29 = vadd.f32 %v2000_v23, %v2313_v56 }
 0x116   : > { %1307 = vst.msk [vmem:[%s2322_s8 + $0x18] sm:$0xf] %vm1300_vm2, %v1812_v24  ;;  %v1342_v30 = vadd.f32 %v1341_v28, %v1340_v25  ;;  %v1813_v31 = vpack.c.bf16 %v2366_v26, %v2366_v26  ;;  %v1347_v45 = vsel %vm1333_vm3, %v2366_v26, 0.0 }
 0x117   : > { %1305 = vst.msk [vmem:[%s2322_s8 + $0x10] sm:$0xf] %vm1300_vm2, %v1810_v27  ;;  %v1811_v32 = vpack.c.bf16 %v2373_v29, %v2373_v29  ;;  %v1343_v33 = vsel %vm1333_vm3, %v2373_v29, 0.0  ;;  %v1969_v34 = vpop.f32.mrb[8].mxu0 }
 0x118   : > { %1308 = vst.msk [vmem:[%s2322_s8 + $0x1c] sm:$0xf] %vm1300_vm2, %v1813_v31  ;;  %v1344_v35 = vadd.f32 %v1343_v33, %v1342_v30  ;;  %v2001_v36 = vadd.f32 %v1969_v34, %v2294_v47  ;;  %v1006_v37 = vpop.f32.mrb[9].mxu0 }
 0x119   : > { %1306 = vst.msk [vmem:[%s2322_s8 + $0x14] sm:$0xf] %vm1300_vm2, %v1811_v32  ;;  %v2002_v39 = vadd.f32 %v1006_v37, %v2296_v48  ;;  %v1970_v40 = vpop.f32.mrb[10].mxu0 }
 0x11a   : > { %v1346_v41 = vadd.f32 %v1345_v38, %v1344_v35  ;;  %v2394_v42 = vadd.f32 %v2001_v36, %v2313_v56  ;;  %v2003_v43 = vadd.f32 %v1970_v40, %v2298_v49  ;;  %v1009_v44 = vpop.f32.mrb[11].mxu0 }
 0x11b   : > { %v2400_v46 = vadd.f32 %v2002_v39, %v2313_v56  ;;  %v2004_v47 = vadd.f32 %v1009_v44, %v2300_v50 }
 0x11c   : > { %v1816_v48 = vpack.c.bf16 %v2394_v42, %v2394_v42  ;;  %v1348_v55 = vadd.f32 %v1347_v45, %v1346_v41  ;;  %v2406_v57 = vadd.f32 %v2003_v43, %v2313_v56  ;;  %v1353_v7 = vsel %vm1333_vm3, %v2394_v42, 0.0 }
 0x11d   : > { %v1814_v49 = vpack.c.bf16 %v2400_v46, %v2400_v46  ;;  %v1349_v58 = vsel %vm1333_vm3, %v2400_v46, 0.0  ;;  %v2413_v59 = vadd.f32 %v2004_v47, %v2313_v56 }
 0x11e   : > { %1311 = vst.msk [vmem:[%s2322_s8 + $0x28] sm:$0xf] %vm1300_vm2, %v1816_v48  ;;  %v1350_v50 = vadd.f32 %v1349_v58, %v1348_v55  ;;  %v1817_v60 = vpack.c.bf16 %v2406_v57, %v2406_v57 }
 0x11f   : > { %1309 = vst.msk [vmem:[%s2322_s8 + $0x20] sm:$0xf] %vm1300_vm2, %v1814_v49  ;;  %v1815_v62 = vpack.c.bf16 %v2413_v59, %v2413_v59  ;;  %v1351_v63 = vsel %vm1333_vm3, %v2413_v59, 0.0  ;;  %v1973_v1 = vpop.f32.mrb[12].mxu0 }
 0x120   : > { %1312 = vst.msk [vmem:[%s2322_s8 + $0x2c] sm:$0xf] %vm1300_vm2, %v1817_v60  ;;  %v1352_v2 = vadd.f32 %v1351_v63, %v1350_v50  ;;  %v2005_v4 = vadd.f32 %v1973_v1, %v2302_v51  ;;  %v1022_v6 = vpop.f32.mrb[13].mxu0  ;;  %v1355_v51 = vsel %vm1333_vm3, %v2406_v57, 0.0 }
 0x121   : > { %1310 = vst.msk [vmem:[%s2322_s8 + $0x24] sm:$0xf] %vm1300_vm2, %v1815_v62  ;;  %v2006_v8 = vadd.f32 %v1022_v6, %v2304_v52  ;;  %v1974_v9 = vpop.f32.mrb[14].mxu0 }
 0x122   : > { %v1354_v10 = vadd.f32 %v1353_v7, %v1352_v2  ;;  %v2434_v11 = vadd.f32 %v2005_v4, %v2313_v56  ;;  %v2007_v12 = vadd.f32 %v1974_v9, %v2306_v53  ;;  %v1025_v13 = vpop.f32.mrb[15].mxu0 }
 0x123   : > { %v2440_v14 = vadd.f32 %v2006_v8, %v2313_v56  ;;  %v2008_v15 = vadd.f32 %v1025_v13, %v2308_v54 }
 0x124   : > { %v1820_v52 = vpack.c.bf16 %v2434_v11, %v2434_v11  ;;  %v1356_v16 = vadd.f32 %v1355_v51, %v1354_v10  ;;  %v2446_v17 = vadd.f32 %v2007_v12, %v2313_v56  ;;  %v1361_v33 = vsel %vm1333_vm3, %v2434_v11, 0.0 }
 0x125   : > { %v1818_v53 = vpack.c.bf16 %v2440_v14, %v2440_v14  ;;  %v1357_v19 = vsel %vm1333_vm3, %v2440_v14, 0.0  ;;  %v2453_v20 = vadd.f32 %v2008_v15, %v2313_v56 }
 0x126   : > { %1315 = vst.msk [vmem:[%s2322_s8 + $0x38] sm:$0xf] %vm1300_vm2, %v1820_v52  ;;  %v1358_v54 = vadd.f32 %v1357_v19, %v1356_v16  ;;  %v1821_v21 = vpack.c.bf16 %v2446_v17, %v2446_v17  ;;  %v1363_v43 = vsel %vm1333_vm3, %v2446_v17, 0.0 }
 0x127   : > { %1313 = vst.msk [vmem:[%s2322_s8 + $0x30] sm:$0xf] %vm1300_vm2, %v1818_v53  ;;  %v1819_v23 = vpack.c.bf16 %v2453_v20, %v2453_v20  ;;  %v1359_v24 = vsel %vm1333_vm3, %v2453_v20, 0.0  ;;  %v1943_v25 = vpop.f32.mrb[16].mxu1  ;;  %v1977_v27 = vpop.f32.mrb[16].mxu0 }
 0x128   : > { %1316 = vst.msk [vmem:[%s2322_s8 + $0x3c] sm:$0xf] %vm1300_vm2, %v1821_v21  ;;  %v1360_v28 = vadd.f32 %v1359_v24, %v1358_v54  ;;  %v2009_v30 = vadd.f32 %v1977_v27, %v1943_v25  ;;  %v706_v31 = vpop.f32.mrb[17].mxu1  ;;  %v1038_v32 = vpop.f32.mrb[17].mxu0 }
 0x129   : > { %1314 = vst.msk [vmem:[%s2322_s8 + $0x34] sm:$0xf] %vm1300_vm2, %v1819_v23  ;;  %v2010_v34 = vadd.f32 %v1038_v32, %v706_v31  ;;  %v1944_v35 = vpop.f32.mrb[18].mxu1  ;;  %v1978_v36 = vpop.f32.mrb[18].mxu0 }
 0x12a   : > { %v1362_v37 = vadd.f32 %v1361_v33, %v1360_v28  ;;  %v2472_v38 = vadd.f32 %v2009_v30, %v2313_v56  ;;  %v2011_v39 = vadd.f32 %v1978_v36, %v1944_v35  ;;  %v709_v40 = vpop.f32.mrb[19].mxu1  ;;  %v1041_v41 = vpop.f32.mrb[19].mxu0 }
 0x12b   : > { %v2477_v44 = vadd.f32 %v2010_v34, %v2313_v56  ;;  %v2012_v45 = vadd.f32 %v1041_v41, %v709_v40 }
 0x12c   : > { %v1824_v47 = vpack.c.bf16 %v2472_v38, %v2472_v38  ;;  %v1364_v48 = vadd.f32 %v1363_v43, %v1362_v37  ;;  %v2482_v55 = vadd.f32 %v2011_v39, %v2313_v56  ;;  %v1369_v10 = vsel %vm1333_vm3, %v2472_v38, 0.0 }
 0x12d   : > { %v1822_v49 = vpack.c.bf16 %v2477_v44, %v2477_v44  ;;  %v1365_v58 = vsel %vm1333_vm3, %v2477_v44, 0.0  ;;  %v2489_v50 = vadd.f32 %v2012_v45, %v2313_v56 }
 0x12e   : > { %1319 = vst.msk [vmem:[%s2322_s8 + $0x48] sm:$0xf] %vm1300_vm2, %v1824_v47  ;;  %v1366_v60 = vadd.f32 %v1365_v58, %v1364_v48  ;;  %v1825_v62 = vpack.c.bf16 %v2482_v55, %v2482_v55  ;;  %v1371_v54 = vsel %vm1333_vm3, %v2482_v55, 0.0 }
 0x12f   : > { %1317 = vst.msk [vmem:[%s2322_s8 + $0x40] sm:$0xf] %vm1300_vm2, %v1822_v49  ;;  %v1823_v63 = vpack.c.bf16 %v2489_v50, %v2489_v50  ;;  %v1367_v1 = vsel %vm1333_vm3, %v2489_v50, 0.0  ;;  %v1947_v2 = vpop.f32.mrb[20].mxu1  ;;  %v1981_v4 = vpop.f32.mrb[20].mxu0 }
 0x130   : > { %1320 = vst.msk [vmem:[%s2322_s8 + $0x4c] sm:$0xf] %vm1300_vm2, %v1825_v62  ;;  %v1368_v6 = vadd.f32 %v1367_v1, %v1366_v60  ;;  %v2013_v7 = vadd.f32 %v1981_v4, %v1947_v2  ;;  %v722_v8 = vpop.f32.mrb[21].mxu1  ;;  %v1054_v9 = vpop.f32.mrb[21].mxu0 }
 0x131   : > { %1318 = vst.msk [vmem:[%s2322_s8 + $0x44] sm:$0xf] %vm1300_vm2, %v1823_v63  ;;  %v2014_v12 = vadd.f32 %v1054_v9, %v722_v8  ;;  %v1948_v13 = vpop.f32.mrb[22].mxu1  ;;  %v1982_v51 = vpop.f32.mrb[22].mxu0 }
 0x132   : > { %v1370_v15 = vadd.f32 %v1369_v10, %v1368_v6  ;;  %v2508_v52 = vadd.f32 %v2013_v7, %v2313_v56  ;;  %v2015_v16 = vadd.f32 %v1982_v51, %v1948_v13  ;;  %v725_v53 = vpop.f32.mrb[23].mxu1  ;;  %v1057_v19 = vpop.f32.mrb[23].mxu0 }
 0x133   : > { %v2513_v21 = vadd.f32 %v2014_v12, %v2313_v56  ;;  %v2016_v23 = vadd.f32 %v1057_v19, %v725_v53 }
 0x134   : > { %v1828_v24 = vpack.c.bf16 %v2508_v52, %v2508_v52  ;;  %v1372_v25 = vadd.f32 %v1371_v54, %v1370_v15  ;;  %v2518_v27 = vadd.f32 %v2015_v16, %v2313_v56  ;;  %v1377_v45 = vsel %vm1333_vm3, %v2508_v52, 0.0 }
 0x135   : > { %v1826_v28 = vpack.c.bf16 %v2513_v21, %v2513_v21  ;;  %v1373_v30 = vsel %vm1333_vm3, %v2513_v21, 0.0  ;;  %v2525_v31 = vadd.f32 %v2016_v23, %v2313_v56 }
 0x136   : > { %1323 = vst.msk [vmem:[%s2322_s8 + $0x58] sm:$0xf] %vm1300_vm2, %v1828_v24  ;;  %v1374_v32 = vadd.f32 %v1373_v30, %v1372_v25  ;;  %v1829_v33 = vpack.c.bf16 %v2518_v27, %v2518_v27  ;;  %v1379_v2 = vsel %vm1333_vm3, %v2518_v27, 0.0 }
 0x137   : > { %1321 = vst.msk [vmem:[%s2322_s8 + $0x50] sm:$0xf] %vm1300_vm2, %v1826_v28  ;;  %v1827_v34 = vpack.c.bf16 %v2525_v31, %v2525_v31  ;;  %v1375_v35 = vsel %vm1333_vm3, %v2525_v31, 0.0  ;;  %v1951_v36 = vpop.f32.mrb[24].mxu1  ;;  %v1985_v37 = vpop.f32.mrb[24].mxu0 }
 0x138   : > { %1324 = vst.msk [vmem:[%s2322_s8 + $0x5c] sm:$0xf] %vm1300_vm2, %v1829_v33  ;;  %v1376_v39 = vadd.f32 %v1375_v35, %v1374_v32  ;;  %v2017_v40 = vadd.f32 %v1985_v37, %v1951_v36  ;;  %v738_v41 = vpop.f32.mrb[25].mxu1  ;;  %v1070_v43 = vpop.f32.mrb[25].mxu0 }
 0x139   : > { %1322 = vst.msk [vmem:[%s2322_s8 + $0x54] sm:$0xf] %vm1300_vm2, %v1827_v34  ;;  %v2018_v47 = vadd.f32 %v1070_v43, %v738_v41  ;;  %v1952_v48 = vpop.f32.mrb[26].mxu1  ;;  %v1986_v49 = vpop.f32.mrb[26].mxu0 }
 0x13a   : > { %v1378_v58 = vadd.f32 %v1377_v45, %v1376_v39  ;;  %v2544_v60 = vadd.f32 %v2017_v40, %v2313_v56  ;;  %v2019_v62 = vadd.f32 %v1986_v49, %v1952_v48  ;;  %v741_v63 = vpop.f32.mrb[27].mxu1  ;;  %v1073_v1 = vpop.f32.mrb[27].mxu0 }
 0x13b   : > { %v2549_v4 = vadd.f32 %v2018_v47, %v2313_v56  ;;  %v2020_v6 = vadd.f32 %v1073_v1, %v741_v63 }
 0x13c   : > { %v1832_v7 = vpack.c.bf16 %v2544_v60, %v2544_v60  ;;  %v1380_v8 = vadd.f32 %v1379_v2, %v1378_v58  ;;  %v2554_v9 = vadd.f32 %v2019_v62, %v2313_v56  ;;  %v1385_v30 = vsel %vm1333_vm3, %v2544_v60, 0.0 }
 0x13d   : > { %v1830_v10 = vpack.c.bf16 %v2549_v4, %v2549_v4  ;;  %v1381_v12 = vsel %vm1333_vm3, %v2549_v4, 0.0  ;;  %v2561_v13 = vadd.f32 %v2020_v6, %v2313_v56 }
 0x13e   : > { %1327 = vst.msk [vmem:[%s2322_s8 + $0x68] sm:$0xf] %vm1300_vm2, %v1832_v7  ;;  %v1382_v51 = vadd.f32 %v1381_v12, %v1380_v8  ;;  %v1833_v15 = vpack.c.bf16 %v2554_v9, %v2554_v9  ;;  %v1387_v41 = vsel %vm1333_vm3, %v2554_v9, 0.0 }
 0x13f   : > { %1325 = vst.msk [vmem:[%s2322_s8 + $0x60] sm:$0xf] %vm1300_vm2, %v1830_v10  ;;  %v1831_v16 = vpack.c.bf16 %v2561_v13, %v2561_v13  ;;  %v1383_v53 = vsel %vm1333_vm3, %v2561_v13, 0.0  ;;  %v1955_v19 = vpop.f32.mrb[28].mxu1  ;;  %v1989_v54 = vpop.f32.mrb[28].mxu0 }
 0x140   : > { %1328 = vst.msk [vmem:[%s2322_s8 + $0x6c] sm:$0xf] %vm1300_vm2, %v1833_v15  ;;  %v1384_v23 = vadd.f32 %v1383_v53, %v1382_v51  ;;  %v2021_v24 = vadd.f32 %v1989_v54, %v1955_v19  ;;  %v754_v25 = vpop.f32.mrb[29].mxu1  ;;  %v1086_v28 = vpop.f32.mrb[29].mxu0 }
 0x141   : > { %1326 = vst.msk [vmem:[%s2322_s8 + $0x64] sm:$0xf] %vm1300_vm2, %v1831_v16  ;;  %v2022_v32 = vadd.f32 %v1086_v28, %v754_v25  ;;  %v1956_v33 = vpop.f32.mrb[30].mxu1  ;;  %v1990_v34 = vpop.f32.mrb[30].mxu0 }
 0x142   : > { %v1386_v35 = vadd.f32 %v1385_v30, %v1384_v23  ;;  %v1170_v36 = vadd.f32 %v2021_v24, %v2313_v56  ;;  %v2023_v37 = vadd.f32 %v1990_v34, %v1956_v33  ;;  %v757_v39 = vpop.f32.mrb[31].mxu1  ;;  %v1089_v40 = vpop.f32.mrb[31].mxu0 }
 0x143   : > { %v1168_v43 = vadd.f32 %v2022_v32, %v2313_v56  ;;  %v2024_v45 = vadd.f32 %v1089_v40, %v757_v39 }
 0x144   : > { %v1836_v47 = vpack.c.bf16 %v1170_v36, %v1170_v36  ;;  %v1388_v48 = vadd.f32 %v1387_v41, %v1386_v35  ;;  %v1171_v49 = vadd.f32 %v2023_v37, %v2313_v56  ;;  %v1393_v10 = vsel %vm1333_vm3, %v1170_v36, 0.0 }
 0x145   : > { %v1834_v58 = vpack.c.bf16 %v1168_v43, %v1168_v43  ;;  %v1389_v62 = vsel %vm1333_vm3, %v1168_v43, 0.0  ;;  %v1169_v63 = vadd.f32 %v2024_v45, %v2313_v56 }
 0x146   : > { %1331 = vst.msk [vmem:[%s2322_s8 + $0x78] sm:$0xf] %vm1300_vm2, %v1836_v47  ;;  %v1390_v1 = vadd.f32 %v1389_v62, %v1388_v48  ;;  %v1837_v2 = vpack.c.bf16 %v1171_v49, %v1171_v49  ;;  %v1395_v56 = vsel %vm1333_vm3, %v1171_v49, 0.0 }
 0x147   : > { %1329 = vst.msk [vmem:[%s2322_s8 + $0x70] sm:$0xf] %vm1300_vm2, %v1834_v58  ;;  %v1835_v6 = vpack.c.bf16 %v1169_v63, %v1169_v63  ;;  %v1391_v7 = vsel %vm1333_vm3, %v1169_v63, 0.0 }
 0x148   : > { %1332 = vst.msk [vmem:[%s2322_s8 + $0x7c] sm:$0xf] %vm1300_vm2, %v1837_v2  ;;  %v1392_v8 = vadd.f32 %v1391_v7, %v1390_v1 }
 0x149   : > { %1330 = vst.msk [vmem:[%s2322_s8 + $0x74] sm:$0xf] %vm1300_vm2, %v1835_v6 }
 0x14a   : > { %v1394_v12 = vadd.f32 %v1393_v10, %v1392_v8 }
 0x14c   : > { %v1396_v51 = vadd.f32 %v1395_v56, %v1394_v12 }
 0x14e   : > { %v1397_v15 = vrot.slane %v1396_v51, 4 }
 0x150   : > { %v1398_v16 = vadd.f32 %v1397_v15, %v1396_v51 }
 0x152   : > { %v1399_v53 = vrot.slane %v1398_v16, 2 }
 0x154   : > { %v1400_v19 = vadd.f32 %v1399_v53, %v1398_v16 }
 0x156   : > { %v1401_v54 = vrot.slane %v1400_v19, 1 }
 0x158   : > { %v1402_v23 = vadd.f32 %v1401_v54, %v1400_v19 }
 0x15a   : > { %v1403_v24 = vmul.f32 0.00390625, %v1402_v23 }
 0x15c   : > { %1437 = vst.msk [vmem:[%s2601_s12] sm:$0x1] %vm1436_vm4, %v1403_v24  ;;  %v1413_v25 = vsub.f32 %v2413_v59, %v1403_v24  ;;  %v1415_v28 = vsub.f32 %v2406_v57, %v1403_v24  ;;  %v1416_v30 = vsub.f32 %v2440_v14, %v1403_v24  ;;  %v2609_v32 = vsub.f32 %v2453_v20, %v1403_v24 }
 0x15d   : > { %v2612_v33 = vsub.f32 %v2434_v11, %v1403_v24  ;;  %v2615_v34 = vsub.f32 %v2446_v17, %v1403_v24  ;;  %v2618_v35 = vsub.f32 %v2477_v44, %v1403_v24  ;;  %v2621_v37 = vsub.f32 %v2489_v50, %v1403_v24 }
 0x15e   : > { %v2624_v59 = vsub.f32 %v2472_v38, %v1403_v24  ;;  %v2627_v57 = vsub.f32 %v2482_v55, %v1403_v24  ;;  %v2630_v14 = vsub.f32 %v2513_v21, %v1403_v24  ;;  %v2633_v11 = vsub.f32 %v2525_v31, %v1403_v24 }
 0x15f   : > { %v2636_v17 = vsub.f32 %v2508_v52, %v1403_v24  ;;  %v2639_v20 = vsub.f32 %v2518_v27, %v1403_v24  ;;  %v2642_v44 = vsub.f32 %v2549_v4, %v1403_v24  ;;  %v2645_v38 = vsub.f32 %v2561_v13, %v1403_v24 }
 0x160   : > { %v2648_v55 = vsub.f32 %v2544_v60, %v1403_v24  ;;  %v2651_v50 = vsub.f32 %v2554_v9, %v1403_v24  ;;  %v2653_v21 = vsub.f32 %v1168_v43, %v1403_v24  ;;  %v2655_v31 = vsub.f32 %v1169_v63, %v1403_v24 }
 0x161   : > { %v2657_v52 = vsub.f32 %v1170_v36, %v1403_v24  ;;  %v2659_v27 = vsub.f32 %v1171_v49, %v1403_v24  ;;  %v1404_v4 = vsub.f32 %v2325_v0, %v1403_v24  ;;  %v1405_v39 = vsub.f32 %v2335_v5, %v1403_v24 }
 0x162   : > { %v1406_v13 = vsub.f32 %v2317_v61, %v1403_v24  ;;  %v1407_v60 = vsub.f32 %v2330_v3, %v1403_v24  ;;  %v1408_v9 = vsub.f32 %v2361_v22, %v1403_v24  ;;  %v1409_v45 = vsub.f32 %v2373_v29, %v1403_v24 }
 0x163   : > { %v1438_v40 = vmul.f32 %v1404_v4, %v1404_v4  ;;  %v1439_v41 = vmul.f32 %v1405_v39, %v1405_v39  ;;  %v1410_v0 = vsub.f32 %v2356_v18, %v1403_v24  ;;  %v1411_v3 = vsub.f32 %v2366_v26, %v1403_v24 }
 0x164   : > { %v1440_v43 = vmul.f32 %v1406_v13, %v1406_v13  ;;  %v1441_v47 = vmul.f32 %v1407_v60, %v1407_v60  ;;  %v1442_v5 = vmul.f32 %v1408_v9, %v1408_v9  ;;  %v1443_v62 = vmul.f32 %v1409_v45, %v1409_v45 }
 0x165   : > { %v1470_v36 = vsel %vm1333_vm3, %v1438_v40, 0.0  ;;  %v1471_v48 = vsel %vm1333_vm3, %v1439_v41, 0.0  ;;  %v1412_v29 = vsub.f32 %v2400_v46, %v1403_v24  ;;  %v1444_v1 = vmul.f32 %v1410_v0, %v1410_v0 }
 0x166   : > { %v1472_v49 = vadd.f32 %v1471_v48, %v1470_v36  ;;  %v1473_v61 = vsel %vm1333_vm3, %v1440_v43, 0.0  ;;  %v1475_v22 = vsel %vm1333_vm3, %v1441_v47, 0.0  ;;  %v1477_v2 = vsel %vm1333_vm3, %v1442_v5, 0.0 }
 0x167   : > { %v1445_v7 = vmul.f32 %v1411_v3, %v1411_v3  ;;  %v1479_v8 = vsel %vm1333_vm3, %v1443_v62, 0.0  ;;  %v1414_v10 = vsub.f32 %v2394_v42, %v1403_v24  ;;  %v1446_v12 = vmul.f32 %v1412_v29, %v1412_v29 }
 0x168   : > { %v1474_v58 = vadd.f32 %v1473_v61, %v1472_v49  ;;  %v1481_v56 = vsel %vm1333_vm3, %v1444_v1, 0.0  ;;  %v1447_v51 = vmul.f32 %v1413_v25, %v1413_v25  ;;  %v1449_v54 = vmul.f32 %v1415_v28, %v1415_v28 }
 0x169   : > { %v1483_v15 = vsel %vm1333_vm3, %v1445_v7, 0.0  ;;  %v1448_v53 = vmul.f32 %v1414_v10, %v1414_v10  ;;  %v1485_v46 = vsel %vm1333_vm3, %v1446_v12, 0.0  ;;  %v1450_v39 = vmul.f32 %v1416_v30, %v1416_v30 }
 0x16a   : > { %v1476_v63 = vadd.f32 %v1475_v22, %v1474_v58  ;;  %v1487_v23 = vsel %vm1333_vm3, %v1447_v51, 0.0  ;;  %v1451_v24 = vmul.f32 %v2609_v32, %v2609_v32  ;;  %v1491_v25 = vsel %vm1333_vm3, %v1449_v54, 0.0 }
 0x16b   : > { %v1489_v13 = vsel %vm1333_vm3, %v1448_v53, 0.0  ;;  %v1452_v40 = vmul.f32 %v2612_v33, %v2612_v33  ;;  %v1493_v41 = vsel %vm1333_vm3, %v1450_v39, 0.0  ;;  %v1453_v28 = vmul.f32 %v2615_v34, %v2615_v34 }
 0x16c   : > { %v1478_v6 = vadd.f32 %v1477_v2, %v1476_v63  ;;  %v1495_v30 = vsel %vm1333_vm3, %v1451_v24, 0.0  ;;  %v1454_v45 = vmul.f32 %v2618_v35, %v2618_v35  ;;  %v1455_v36 = vmul.f32 %v2621_v37, %v2621_v37 }
 0x16d   : > { %v1497_v32 = vsel %vm1333_vm3, %v1452_v40, 0.0  ;;  %v1499_v33 = vsel %vm1333_vm3, %v1453_v28, 0.0  ;;  %v1456_v49 = vmul.f32 %v2624_v59, %v2624_v59  ;;  %v1457_v5 = vmul.f32 %v2627_v57, %v2627_v57 }
 0x16e   : > { %v1480_v18 = vadd.f32 %v1479_v8, %v1478_v6  ;;  %v1501_v34 = vsel %vm1333_vm3, %v1454_v45, 0.0  ;;  %v1503_v35 = vsel %vm1333_vm3, %v1455_v36, 0.0  ;;  %v1458_v58 = vmul.f32 %v2630_v14, %v2630_v14 }
 0x16f   : > { %v1505_v37 = vsel %vm1333_vm3, %v1456_v49, 0.0  ;;  %v1459_v62 = vmul.f32 %v2633_v11, %v2633_v11  ;;  %v1507_v59 = vsel %vm1333_vm3, %v1457_v5, 0.0  ;;  %v1460_v63 = vmul.f32 %v2636_v17, %v2636_v17 }
 0x170   : > { %v1482_v26 = vadd.f32 %v1481_v56, %v1480_v18  ;;  %v1509_v57 = vsel %vm1333_vm3, %v1458_v58, 0.0  ;;  %v1461_v1 = vmul.f32 %v2639_v20, %v2639_v20  ;;  %v1462_v6 = vmul.f32 %v2642_v44, %v2642_v44 }
 0x171   : > { %v1511_v14 = vsel %vm1333_vm3, %v1459_v62, 0.0  ;;  %v1513_v11 = vsel %vm1333_vm3, %v1460_v63, 0.0  ;;  %v1463_v8 = vmul.f32 %v2645_v38, %v2645_v38  ;;  %v1464_v10 = vmul.f32 %v2648_v55, %v2648_v55 }
 0x172   : > { %v1484_v16 = vadd.f32 %v1483_v15, %v1482_v26  ;;  %v1515_v17 = vsel %vm1333_vm3, %v1461_v1, 0.0  ;;  %v1517_v20 = vsel %vm1333_vm3, %v1462_v6, 0.0  ;;  %v1465_v56 = vmul.f32 %v2651_v50, %v2651_v50 }
 0x173   : > { %v1519_v44 = vsel %vm1333_vm3, %v1463_v8, 0.0  ;;  %v1466_v51 = vmul.f32 %v2653_v21, %v2653_v21  ;;  %v1521_v38 = vsel %vm1333_vm3, %v1464_v10, 0.0  ;;  %v1469_v54 = vmul.f32 %v2659_v27, %v2659_v27 }
 0x174   : > { %v1486_v19 = vadd.f32 %v1485_v46, %v1484_v16  ;;  %v1467_v16 = vmul.f32 %v2655_v31, %v2655_v31  ;;  %v1523_v55 = vsel %vm1333_vm3, %v1465_v56, 0.0  ;;  %v1468_v46 = vmul.f32 %v2657_v52, %v2657_v52 }
 0x175   : > { %v1525_v50 = vsel %vm1333_vm3, %v1466_v51, 0.0  ;;  %v1531_v31 = vsel %vm1333_vm3, %v1469_v54, 0.0 }
 0x176   : > { %v1488_v4 = vadd.f32 %v1487_v23, %v1486_v19  ;;  %v1527_v21 = vsel %vm1333_vm3, %v1467_v16, 0.0 }
 0x178   : > { %v1490_v42 = vadd.f32 %v1489_v13, %v1488_v4  ;;  %v1529_v4 = vsel %vm1333_vm3, %v1468_v46, 0.0 }
 0x17a   : > { %v1492_v60 = vadd.f32 %v1491_v25, %v1490_v42 }
 0x17c   : > { %v1494_v9 = vadd.f32 %v1493_v41, %v1492_v60 }
 0x17e   : > { %v1496_v43 = vadd.f32 %v1495_v30, %v1494_v9 }
 0x180   : > { %v1498_v47 = vadd.f32 %v1497_v32, %v1496_v43 }
 0x182   : > { %v1500_v48 = vadd.f32 %v1499_v33, %v1498_v47 }
 0x184   : > { %v1502_v0 = vadd.f32 %v1501_v34, %v1500_v48 }
 0x186   : > { %v1504_v61 = vadd.f32 %v1503_v35, %v1502_v0 }
 0x188   : > { %v1506_v3 = vadd.f32 %v1505_v37, %v1504_v61 }
 0x18a   : > { %v1508_v22 = vadd.f32 %v1507_v59, %v1506_v3 }
 0x18c   : > { %v1510_v29 = vadd.f32 %v1509_v57, %v1508_v22 }
 0x18e   : > { %v1512_v2 = vadd.f32 %v1511_v14, %v1510_v29 }
 0x190   : > { %v1514_v7 = vadd.f32 %v1513_v11, %v1512_v2 }
 0x192   : > { %v1516_v18 = vadd.f32 %v1515_v17, %v1514_v7 }
 0x194   : > { %v1518_v12 = vadd.f32 %v1517_v20, %v1516_v18 }
 0x196   : > { %v1520_v26 = vadd.f32 %v1519_v44, %v1518_v12 }
 0x198   : > { %v1522_v15 = vadd.f32 %v1521_v38, %v1520_v26 }
 0x19a   : > { %v1524_v53 = vadd.f32 %v1523_v55, %v1522_v15 }
 0x19c   : > { %v1526_v19 = vadd.f32 %v1525_v50, %v1524_v53 }
 0x19e   : > { %v1528_v23 = vadd.f32 %v1527_v21, %v1526_v19 }
 0x1a0   : > { %v1530_v39 = vadd.f32 %v1529_v4, %v1528_v23 }
 0x1a2   : > { %v1532_v13 = vadd.f32 %v1531_v31, %v1530_v39 }
 0x1a4   : > { %v1533_v42 = vrot.slane %v1532_v13, 4 }
 0x1a6   : > { %v1534_v24 = vadd.f32 %v1533_v42, %v1532_v13 }
 0x1a8   : > { %v1535_v25 = vrot.slane %v1534_v24, 2 }
 0x1aa   : > { %v1536_v52 = vadd.f32 %v1535_v25, %v1534_v24 }
 0x1ac   : > { %v1537_v60 = vrot.slane %v1536_v52, 1 }
 0x1ae   : > { %v1538_v40 = vadd.f32 %v1537_v60, %v1536_v52 }
 0x1b0   : > { %1539 = vst.msk [vmem:[%s2601_s12 + $0x1] sm:$0x1] %vm1436_vm4, %v1538_v40 }
 0x1b1 PF: > { %s15_s17 = sadd.s32 1, %s2144_s17   ;;  %s2757_s15 = smov %s2140_s16 }
 0x1b2   : > { %p12_p5 = scmp.ge.s32.totalorder %s15_s17, 4   ;;  %s2758_s16 = smov %s2760_s18 }
 0x1b4   :  { %14 = sbr.rel (!%p12_p5) target bundleno = 2 (0x2), region = 76 }

</bundles_post_ra>
